<compile_context>
chip_gen: v7x
topology: tpu7x:2x2x1
jax: 0.10.0
libtpu: 0.0.40
codegen_flags: <defaults>
</compile_context>

<pallas_src>
import functools

import numpy as np
import jax
import jax.numpy as jnp
from jax import lax
from jax.experimental import pallas as pl
from jax.experimental.pallas import tpu as pltpu


# Layer-1 "NT" contraction: contract the D_in (minor) axis of both operands,
# W1 [H, D_in]  x  x_chunk [chunk, D_in]  ->  [H, chunk].
_NT_DIMS = (((1,), (1,)), ((), ()))


def _fnn_kernel(scale_ref, x_ref,
                w1_ref, b1_ref, w2_ref, b2_ref, w3_ref, b3_ref, w4_ref, b4_ref,
                y_ref, *, chunk, native_x):
    """One batch tile, feature-major compute.

    Activations are [H, chunk] f32 so the batch sits on the 128-wide lane axis
    (dense VPU/EUP ops, lane-dense stores).

      native_x=True  : x_ref is [tb, D_in]   (HBM-native row-major batch)
      native_x=False : x_ref is [D_in, tb]   (wrapper-transposed fallback)
      weights [out, in] f32, biases [out, 1] f32, y_ref [D_out, tb] f32.
    """
    s = scale_ref[0, 0]                      # scalar (n * a1) from SMEM
    w1 = w1_ref[...]; b1 = b1_ref[...]
    w2 = w2_ref[...]; b2 = b2_ref[...]
    w3 = w3_ref[...]; b3 = b3_ref[...]
    w4 = w4_ref[...]; b4 = b4_ref[...]

    tb = x_ref.shape[0] if native_x else x_ref.shape[1]
    n_chunks = tb // chunk

    # Fully unrolled inner chunk loop (short, static trip count): bounds the
    # per-matmul lane width (vreg pressure) while the DMA block stays large to
    # amortize per-grid-step overhead.
    for c in range(n_chunks):
        off = c * chunk                                            # static, 128-aligned
        if native_x:
            xc = x_ref[pl.ds(off, chunk), :]                       # [chunk, D_in]
            z1 = lax.dot_general(w1, xc, _NT_DIMS,
                                 preferred_element_type=jnp.float32)
        else:
            xc = x_ref[:, pl.ds(off, chunk)]                       # [D_in, chunk]
            z1 = jnp.dot(w1, xc, preferred_element_type=jnp.float32)
        h1 = jnp.tanh(s * (z1 + b1))
        h2 = jnp.tanh(s * (jnp.dot(w2, h1, preferred_element_type=jnp.float32) + b2))
        h3 = jnp.tanh(s * (jnp.dot(w3, h2, preferred_element_type=jnp.float32) + b3))
        yc = s * (jnp.dot(w4, h3, preferred_element_type=jnp.float32) + b4)
        y_ref[:, pl.ds(off, chunk)] = yc.astype(y_ref.dtype)


def _round_up(n, m):
    return ((n + m - 1) // m) * m


def _fnn_forward_impl(x, params, scale, *, tb, chunk, native_x):
    B, D_in = x.shape
    H = params["w1"].shape[0]
    D_out = params["w4"].shape[0]

    # ---- tile sizing --------------------------------------------------------
    # chunk: lane width of each in-kernel matmul (multiple of 128).  Keeps the
    #        live activations [H, chunk] f32 well under the 64-vreg file.
    # tb:    batch rows per grid step (DMA block).  Large to amortize the
    #        ~0.35 us per-step cost, but capped at ~ceil(B/2) so the "parallel"
    #        grid has >= 2 tiles whenever B allows it (v7x megacore).
    half_b = _round_up(pl.cdiv(B, 2), 128)
    chunk = max(128, (min(chunk, half_b) // 128) * 128)
    tb = max(chunk, min(_round_up(tb, chunk), _round_up(half_b, chunk)))
    num_tiles = pl.cdiv(B, tb)
    Bp = num_tiles * tb

    # f32 everywhere: MXU is not the binding unit; keeps exact module numerics.
    w1 = params["w1"].astype(jnp.float32)            # [H, D_in]
    w2 = params["w2"].astype(jnp.float32)            # [H, H]
    w3 = params["w3"].astype(jnp.float32)            # [H, H]
    w4 = params["w4"].astype(jnp.float32)            # [D_out, H]
    b1 = params["b1"].reshape(H, 1).astype(jnp.float32)
    b2 = params["b2"].reshape(H, 1).astype(jnp.float32)
    b3 = params["b3"].reshape(H, 1).astype(jnp.float32)
    b4 = params["b4"].reshape(D_out, 1).astype(jnp.float32)
    scale_arr = jnp.asarray(scale, jnp.float32).reshape(1, 1)

    xf = x.astype(jnp.float32)
    if native_x:
        xp = jnp.pad(xf, ((0, Bp - B), (0, 0))) if Bp != B else xf
        x_spec = pl.BlockSpec((tb, D_in), lambda i: (i, 0))
    else:
        # Fallback only: one extra HBM pass over x.
        xt = xf.T
        xp = jnp.pad(xt, ((0, 0), (0, Bp - B))) if Bp != B else xt
        x_spec = pl.BlockSpec((D_in, tb), lambda i: (0, i))

    const = lambda i: (0, 0)   # weights / biases / scale stay resident across tiles

    flops = 2 * Bp * (D_in * H + 2 * H * H + H * D_out)
    transcendentals = 3 * Bp * H
    bytes_accessed = 4 * (Bp * (D_in + D_out)
                          + D_in * H + 2 * H * H + H * D_out + 3 * H + D_out + 1)

    y_t = pl.pallas_call(
        functools.partial(_fnn_kernel, chunk=chunk, native_x=native_x),
        out_shape=jax.ShapeDtypeStruct((D_out, Bp), jnp.float32),
        grid=(num_tiles,),
        in_specs=[
            pl.BlockSpec((1, 1), const, memory_space=pltpu.MemorySpace.SMEM),
            x_spec,
            pl.BlockSpec((H, D_in), const),
            pl.BlockSpec((H, 1), const),
            pl.BlockSpec((H, H), const),
            pl.BlockSpec((H, 1), const),
            pl.BlockSpec((H, H), const),
            pl.BlockSpec((H, 1), const),
            pl.BlockSpec((D_out, H), const),
            pl.BlockSpec((D_out, 1), const),
        ],
        out_specs=pl.BlockSpec((D_out, tb), lambda i: (0, i)),
        compiler_params=pltpu.CompilerParams(
            dimension_semantics=("parallel",)),
        cost_estimate=pl.CostEstimate(flops=flops,
                                      transcendentals=transcendentals,
                                      bytes_accessed=bytes_accessed),
    )(scale_arr, xp, w1, b1, w2, b2, w3, b3, w4, b4)

    # Kernel output is feature-major [D_out, Bp] (lane-dense stores).  The final
    # transpose back to the module's [B, D_out] is a tiny D_out-row XLA pass.
    return y_t[:, :B].T


def fnn_forward(x, params, scale, *, tb=2048, chunk=256):
    """FNN forward: x [B, D_in] -> y [B, D_out].

    Tries the HBM-native x layout (no wrapper transpose; the layer-1
    contraction absorbs the relayout).  If that layer-1 form fails to lower on
    the local toolchain, falls back to the known-good wrapper-transposed path.
    """
    try:
        return _fnn_forward_impl(x, params, scale, tb=tb, chunk=chunk,
                                 native_x=True)
    except Exception:
        # TODO(synk): drop this fallback once NT-form layer-1 lowering is
        # confirmed on all target toolchains.
        return _fnn_forward_impl(x, params, scale, tb=tb, chunk=chunk,
                                 native_x=False)


def fnn_reference(x, params, scale):
    """Pure-JAX reference mirroring the PyTorch forward (exact f32 semantics)."""
    def lin(v, w, b):
        return v @ w.T + b
    y1 = jnp.tanh(scale * lin(x, params["w1"], params["b1"]))
    y2 = jnp.tanh(scale * lin(y1, params["w2"], params["b2"]))
    y3 = jnp.tanh(scale * lin(y2, params["w3"], params["b3"]))
    return scale * lin(y3, params["w4"], params["b4"])


def init_params(key, D_in, H, D_out):
    """Deterministic init matching the module's __init__ (normal inits)."""
    ks = jax.random.split(key, 8)
    params = {
        "w1": jax.random.normal(ks[0], (H, D_in), jnp.float32) * np.sqrt(2.0 / (D_in + H)),
        "w2": jax.random.normal(ks[1], (H, H), jnp.float32) * np.sqrt(2.0 / (H + H)),
        "w3": jax.random.normal(ks[2], (H, H), jnp.float32) * np.sqrt(2.0 / (H + H)),
        "w4": jax.random.normal(ks[3], (D_out, H), jnp.float32) * np.sqrt(2.0 / (H + D_out)),
        "b1": jax.random.normal(ks[4], (H,), jnp.float32),
        "b2": jax.random.normal(ks[5], (H,), jnp.float32),
        "b3": jax.random.normal(ks[6], (H,), jnp.float32),
        "b4": jax.random.normal(ks[7], (D_out,), jnp.float32),
    }
    a1 = jnp.float32(0.1)           # nn.Parameter([0.1])
    n = 1.0 / a1                    # self.n = 1 / a1.data
    scale = n * a1                  # n * a1 appears in every layer of forward
    return params, scale


if __name__ == "__main__":
    # Shapes consistent with the module's Linear stack; B=1000 exercises a
    # 2-tile "parallel" grid, the multi-chunk inner loop, and the pad path.
    B, D_in, H, D_out = 1000, 8, 32, 4

    key = jax.random.PRNGKey(0)
    kx, kp = jax.random.split(key)
    x = jax.random.normal(kx, (B, D_in), jnp.float32)
    params, scale = init_params(kp, D_in, H, D_out)

    y = fnn_forward(x, params, scale)
    y = jax.block_until_ready(y)
    assert y.shape == (B, D_out)

    y_ref = fnn_reference(x, params, scale)
    np.testing.assert_allclose(np.asarray(y), np.asarray(y_ref),
                               rtol=2e-2, atol=2e-2)

    print("KERNEL_OK")
</pallas_src>

<mosaic_0001>
module attributes {stable_mosaic.version = 11 : i64} {
  func.func @_fnn_kernel(%arg0: i32, %arg1: memref<1x1xf32, #tpu.memory_space<smem>>, %arg2: memref<512x8xf32, #tpu.memory_space<vmem>>, %arg3: memref<32x8xf32, #tpu.memory_space<vmem>>, %arg4: memref<32x1xf32, #tpu.memory_space<vmem>>, %arg5: memref<32x32xf32, #tpu.memory_space<vmem>>, %arg6: memref<32x1xf32, #tpu.memory_space<vmem>>, %arg7: memref<32x32xf32, #tpu.memory_space<vmem>>, %arg8: memref<32x1xf32, #tpu.memory_space<vmem>>, %arg9: memref<4x32xf32, #tpu.memory_space<vmem>>, %arg10: memref<4x1xf32, #tpu.memory_space<vmem>>, %arg11: memref<4x512xf32, #tpu.memory_space<vmem>>) attributes {dimension_semantics = [#tpu.dimension_semantics<parallel>], iteration_bounds = array<i64: 2>, scalar_prefetch = 0 : i64, scratch_operands = 0 : i64, tpu.core_type = #tpu.core_type<tc>, window_params = [{transform_indices = @transform_0, window_bounds = array<i64: 1, 1>}, {transform_indices = @transform_1, window_bounds = array<i64: 512, 8>}, {pipeline_mode = #tpu.pipeline_mode<synchronous>, transform_indices = @transform_2, window_bounds = array<i64: 32, 8>}, {pipeline_mode = #tpu.pipeline_mode<synchronous>, transform_indices = @transform_3, window_bounds = array<i64: 32, 1>}, {pipeline_mode = #tpu.pipeline_mode<synchronous>, transform_indices = @transform_4, window_bounds = array<i64: 32, 32>}, {pipeline_mode = #tpu.pipeline_mode<synchronous>, transform_indices = @transform_5, window_bounds = array<i64: 32, 1>}, {pipeline_mode = #tpu.pipeline_mode<synchronous>, transform_indices = @transform_6, window_bounds = array<i64: 32, 32>}, {pipeline_mode = #tpu.pipeline_mode<synchronous>, transform_indices = @transform_7, window_bounds = array<i64: 32, 1>}, {pipeline_mode = #tpu.pipeline_mode<synchronous>, transform_indices = @transform_8, window_bounds = array<i64: 4, 32>}, {pipeline_mode = #tpu.pipeline_mode<synchronous>, transform_indices = @transform_9, window_bounds = array<i64: 4, 1>}, {transform_indices = @transform_10, window_bounds = array<i64: 4, 512>}]} {
    %c0 = arith.constant 0 : index
    %c0_0 = arith.constant 0 : index
    %0 = memref.load %arg1[%c0, %c0_0] : memref<1x1xf32, #tpu.memory_space<smem>>
    %c0_1 = arith.constant 0 : index
    %c0_2 = arith.constant 0 : index
    %1 = vector.load %arg3[%c0_1, %c0_2] : memref<32x8xf32, #tpu.memory_space<vmem>>, vector<32x8xf32>
    %c0_3 = arith.constant 0 : index
    %c0_4 = arith.constant 0 : index
    %2 = vector.load %arg4[%c0_3, %c0_4] : memref<32x1xf32, #tpu.memory_space<vmem>>, vector<32x1xf32>
    %c0_5 = arith.constant 0 : index
    %c0_6 = arith.constant 0 : index
    %3 = vector.load %arg5[%c0_5, %c0_6] : memref<32x32xf32, #tpu.memory_space<vmem>>, vector<32x32xf32>
    %c0_7 = arith.constant 0 : index
    %c0_8 = arith.constant 0 : index
    %4 = vector.load %arg6[%c0_7, %c0_8] : memref<32x1xf32, #tpu.memory_space<vmem>>, vector<32x1xf32>
    %c0_9 = arith.constant 0 : index
    %c0_10 = arith.constant 0 : index
    %5 = vector.load %arg7[%c0_9, %c0_10] : memref<32x32xf32, #tpu.memory_space<vmem>>, vector<32x32xf32>
    %c0_11 = arith.constant 0 : index
    %c0_12 = arith.constant 0 : index
    %6 = vector.load %arg8[%c0_11, %c0_12] : memref<32x1xf32, #tpu.memory_space<vmem>>, vector<32x1xf32>
    %c0_13 = arith.constant 0 : index
    %c0_14 = arith.constant 0 : index
    %7 = vector.load %arg9[%c0_13, %c0_14] : memref<4x32xf32, #tpu.memory_space<vmem>>, vector<4x32xf32>
    %c0_15 = arith.constant 0 : index
    %c0_16 = arith.constant 0 : index
    %8 = vector.load %arg10[%c0_15, %c0_16] : memref<4x1xf32, #tpu.memory_space<vmem>>, vector<4x1xf32>
    %c0_17 = arith.constant 0 : index
    %c0_18 = arith.constant 0 : index
    %9 = vector.load %arg2[%c0_17, %c0_18] : memref<512x8xf32, #tpu.memory_space<vmem>>, vector<256x8xf32>
    %cst = arith.constant dense<0.000000e+00> : vector<32x256xf32>
    %10 = tpu.matmul %1, %9, %cst {dimension_numbers = #tpu.dot_dimension_numbers<[1], [1], [0], [0], [0, 0, 1, 0], [], []>} : vector<32x8xf32>, vector<256x8xf32>, vector<32x256xf32> -> vector<32x256xf32>
    %11 = vector.broadcast %2 : vector<32x1xf32> to vector<32x256xf32>
    %12 = arith.addf %10, %11 : vector<32x256xf32>
    %13 = vector.broadcast %0 : f32 to vector<32x256xf32>
    %14 = arith.mulf %13, %12 : vector<32x256xf32>
    %15 = math.tanh %14 : vector<32x256xf32>
    %cst_19 = arith.constant dense<0.000000e+00> : vector<32x256xf32>
    %16 = tpu.matmul %3, %15, %cst_19 {dimension_numbers = #tpu.dot_dimension_numbers<[1], [0], [0], [1], [0, 0, 1, 1], [], []>} : vector<32x32xf32>, vector<32x256xf32>, vector<32x256xf32> -> vector<32x256xf32>
    %17 = vector.broadcast %4 : vector<32x1xf32> to vector<32x256xf32>
    %18 = arith.addf %16, %17 : vector<32x256xf32>
    %19 = vector.broadcast %0 : f32 to vector<32x256xf32>
    %20 = arith.mulf %19, %18 : vector<32x256xf32>
    %21 = math.tanh %20 : vector<32x256xf32>
    %cst_20 = arith.constant dense<0.000000e+00> : vector<32x256xf32>
    %22 = tpu.matmul %5, %21, %cst_20 {dimension_numbers = #tpu.dot_dimension_numbers<[1], [0], [0], [1], [0, 0, 1, 1], [], []>} : vector<32x32xf32>, vector<32x256xf32>, vector<32x256xf32> -> vector<32x256xf32>
    %23 = vector.broadcast %6 : vector<32x1xf32> to vector<32x256xf32>
    %24 = arith.addf %22, %23 : vector<32x256xf32>
    %25 = vector.broadcast %0 : f32 to vector<32x256xf32>
    %26 = arith.mulf %25, %24 : vector<32x256xf32>
    %27 = math.tanh %26 : vector<32x256xf32>
    %cst_21 = arith.constant dense<0.000000e+00> : vector<4x256xf32>
    %28 = tpu.matmul %7, %27, %cst_21 {dimension_numbers = #tpu.dot_dimension_numbers<[1], [0], [0], [1], [0, 0, 1, 1], [], []>} : vector<4x32xf32>, vector<32x256xf32>, vector<4x256xf32> -> vector<4x256xf32>
    %29 = vector.broadcast %8 : vector<4x1xf32> to vector<4x256xf32>
    %30 = arith.addf %28, %29 : vector<4x256xf32>
    %31 = vector.broadcast %0 : f32 to vector<4x256xf32>
    %32 = arith.mulf %31, %30 : vector<4x256xf32>
    %c0_22 = arith.constant 0 : index
    %c0_23 = arith.constant 0 : index
    %33 = vector.load %arg11[%c0_22, %c0_23] : memref<4x512xf32, #tpu.memory_space<vmem>>, vector<4x256xf32>
    tpu.vector_store %arg11[%c0_22, %c0_23], %32 {strides = array<i32>} : memref<4x512xf32, #tpu.memory_space<vmem>>, vector<4x256xf32>,
    %c256 = arith.constant 256 : index
    %c0_24 = arith.constant 0 : index
    %34 = vector.load %arg2[%c256, %c0_24] : memref<512x8xf32, #tpu.memory_space<vmem>>, vector<256x8xf32>
    %cst_25 = arith.constant dense<0.000000e+00> : vector<32x256xf32>
    %35 = tpu.matmul %1, %34, %cst_25 {dimension_numbers = #tpu.dot_dimension_numbers<[1], [1], [0], [0], [0, 0, 1, 0], [], []>} : vector<32x8xf32>, vector<256x8xf32>, vector<32x256xf32> -> vector<32x256xf32>
    %36 = vector.broadcast %2 : vector<32x1xf32> to vector<32x256xf32>
    %37 = arith.addf %35, %36 : vector<32x256xf32>
    %38 = vector.broadcast %0 : f32 to vector<32x256xf32>
    %39 = arith.mulf %38, %37 : vector<32x256xf32>
    %40 = math.tanh %39 : vector<32x256xf32>
    %cst_26 = arith.constant dense<0.000000e+00> : vector<32x256xf32>
    %41 = tpu.matmul %3, %40, %cst_26 {dimension_numbers = #tpu.dot_dimension_numbers<[1], [0], [0], [1], [0, 0, 1, 1], [], []>} : vector<32x32xf32>, vector<32x256xf32>, vector<32x256xf32> -> vector<32x256xf32>
    %42 = vector.broadcast %4 : vector<32x1xf32> to vector<32x256xf32>
    %43 = arith.addf %41, %42 : vector<32x256xf32>
    %44 = vector.broadcast %0 : f32 to vector<32x256xf32>
    %45 = arith.mulf %44, %43 : vector<32x256xf32>
    %46 = math.tanh %45 : vector<32x256xf32>
    %cst_27 = arith.constant dense<0.000000e+00> : vector<32x256xf32>
    %47 = tpu.matmul %5, %46, %cst_27 {dimension_numbers = #tpu.dot_dimension_numbers<[1], [0], [0], [1], [0, 0, 1, 1], [], []>} : vector<32x32xf32>, vector<32x256xf32>, vector<32x256xf32> -> vector<32x256xf32>
    %48 = vector.broadcast %6 : vector<32x1xf32> to vector<32x256xf32>
    %49 = arith.addf %47, %48 : vector<32x256xf32>
    %50 = vector.broadcast %0 : f32 to vector<32x256xf32>
    %51 = arith.mulf %50, %49 : vector<32x256xf32>
    %52 = math.tanh %51 : vector<32x256xf32>
    %cst_28 = arith.constant dense<0.000000e+00> : vector<4x256xf32>
    %53 = tpu.matmul %7, %52, %cst_28 {dimension_numbers = #tpu.dot_dimension_numbers<[1], [0], [0], [1], [0, 0, 1, 1], [], []>} : vector<4x32xf32>, vector<32x256xf32>, vector<4x256xf32> -> vector<4x256xf32>
    %54 = vector.broadcast %8 : vector<4x1xf32> to vector<4x256xf32>
    %55 = arith.addf %53, %54 : vector<4x256xf32>
    %56 = vector.broadcast %0 : f32 to vector<4x256xf32>
    %57 = arith.mulf %56, %55 : vector<4x256xf32>
    %c0_29 = arith.constant 0 : index
    %c256_30 = arith.constant 256 : index
    %58 = vector.load %arg11[%c0_29, %c256_30] : memref<4x512xf32, #tpu.memory_space<vmem>>, vector<4x256xf32>
    tpu.vector_store %arg11[%c0_29, %c256_30], %57 {strides = array<i32>} : memref<4x512xf32, #tpu.memory_space<vmem>>, vector<4x256xf32>,
    return
  }
  func.func @transform_0(%arg0: i32) -> (i32, i32) {
    %c0_i32 = arith.constant 0 : i32
    %c0_i32_0 = arith.constant 0 : i32
    %c0_i32_1 = arith.constant 0 : i32
    return %c0_i32, %c0_i32_0 : i32, i32
  }
  func.func @transform_1(%arg0: i32) -> (i32, i32) {
    %c0_i32 = arith.constant 0 : i32
    %c0_i32_0 = arith.constant 0 : i32
    return %arg0, %c0_i32 : i32, i32
  }
  func.func @transform_2(%arg0: i32) -> (i32, i32) {
    %c0_i32 = arith.constant 0 : i32
    %c0_i32_0 = arith.constant 0 : i32
    %c0_i32_1 = arith.constant 0 : i32
    return %c0_i32, %c0_i32_0 : i32, i32
  }
  func.func @transform_3(%arg0: i32) -> (i32, i32) {
    %c0_i32 = arith.constant 0 : i32
    %c0_i32_0 = arith.constant 0 : i32
    %c0_i32_1 = arith.constant 0 : i32
    return %c0_i32, %c0_i32_0 : i32, i32
  }
  func.func @transform_4(%arg0: i32) -> (i32, i32) {
    %c0_i32 = arith.constant 0 : i32
    %c0_i32_0 = arith.constant 0 : i32
    %c0_i32_1 = arith.constant 0 : i32
    return %c0_i32, %c0_i32_0 : i32, i32
  }
  func.func @transform_5(%arg0: i32) -> (i32, i32) {
    %c0_i32 = arith.constant 0 : i32
    %c0_i32_0 = arith.constant 0 : i32
    %c0_i32_1 = arith.constant 0 : i32
    return %c0_i32, %c0_i32_0 : i32, i32
  }
  func.func @transform_6(%arg0: i32) -> (i32, i32) {
    %c0_i32 = arith.constant 0 : i32
    %c0_i32_0 = arith.constant 0 : i32
    %c0_i32_1 = arith.constant 0 : i32
    return %c0_i32, %c0_i32_0 : i32, i32
  }
  func.func @transform_7(%arg0: i32) -> (i32, i32) {
    %c0_i32 = arith.constant 0 : i32
    %c0_i32_0 = arith.constant 0 : i32
    %c0_i32_1 = arith.constant 0 : i32
    return %c0_i32, %c0_i32_0 : i32, i32
  }
  func.func @transform_8(%arg0: i32) -> (i32, i32) {
    %c0_i32 = arith.constant 0 : i32
    %c0_i32_0 = arith.constant 0 : i32
    %c0_i32_1 = arith.constant 0 : i32
    return %c0_i32, %c0_i32_0 : i32, i32
  }
  func.func @transform_9(%arg0: i32) -> (i32, i32) {
    %c0_i32 = arith.constant 0 : i32
    %c0_i32_0 = arith.constant 0 : i32
    %c0_i32_1 = arith.constant 0 : i32
    return %c0_i32, %c0_i32_0 : i32, i32
  }
  func.func @transform_10(%arg0: i32) -> (i32, i32) {
    %c0_i32 = arith.constant 0 : i32
    %c0_i32_0 = arith.constant 0 : i32
    return %c0_i32, %arg0 : i32, i32
  }
}

module attributes {stable_mosaic.version = 11 : i64} {
  func.func @_fnn_kernel(%arg0: i32, %arg1: memref<1x1xf32, #tpu.memory_space<smem>>, %arg2: memref<8x512xf32, #tpu.memory_space<vmem>>, %arg3: memref<32x8xf32, #tpu.memory_space<vmem>>, %arg4: memref<32x1xf32, #tpu.memory_space<vmem>>, %arg5: memref<32x32xf32, #tpu.memory_space<vmem>>, %arg6: memref<32x1xf32, #tpu.memory_space<vmem>>, %arg7: memref<32x32xf32, #tpu.memory_space<vmem>>, %arg8: memref<32x1xf32, #tpu.memory_space<vmem>>, %arg9: memref<4x32xf32, #tpu.memory_space<vmem>>, %arg10: memref<4x1xf32, #tpu.memory_space<vmem>>, %arg11: memref<4x512xf32, #tpu.memory_space<vmem>>) attributes {dimension_semantics = [#tpu.dimension_semantics<parallel>], iteration_bounds = array<i64: 2>, scalar_prefetch = 0 : i64, scratch_operands = 0 : i64, tpu.core_type = #tpu.core_type<tc>, window_params = [{transform_indices = @transform_0, window_bounds = array<i64: 1, 1>}, {transform_indices = @transform_1, window_bounds = array<i64: 8, 512>}, {pipeline_mode = #tpu.pipeline_mode<synchronous>, transform_indices = @transform_2, window_bounds = array<i64: 32, 8>}, {pipeline_mode = #tpu.pipeline_mode<synchronous>, transform_indices = @transform_3, window_bounds = array<i64: 32, 1>}, {pipeline_mode = #tpu.pipeline_mode<synchronous>, transform_indices = @transform_4, window_bounds = array<i64: 32, 32>}, {pipeline_mode = #tpu.pipeline_mode<synchronous>, transform_indices = @transform_5, window_bounds = array<i64: 32, 1>}, {pipeline_mode = #tpu.pipeline_mode<synchronous>, transform_indices = @transform_6, window_bounds = array<i64: 32, 32>}, {pipeline_mode = #tpu.pipeline_mode<synchronous>, transform_indices = @transform_7, window_bounds = array<i64: 32, 1>}, {pipeline_mode = #tpu.pipeline_mode<synchronous>, transform_indices = @transform_8, window_bounds = array<i64: 4, 32>}, {pipeline_mode = #tpu.pipeline_mode<synchronous>, transform_indices = @transform_9, window_bounds = array<i64: 4, 1>}, {transform_indices = @transform_10, window_bounds = array<i64: 4, 512>}]} {
    %c0 = arith.constant 0 : index
    %c0_0 = arith.constant 0 : index
    %0 = memref.load %arg1[%c0, %c0_0] : memref<1x1xf32, #tpu.memory_space<smem>>
    %c0_1 = arith.constant 0 : index
    %c0_2 = arith.constant 0 : index
    %1 = vector.load %arg3[%c0_1, %c0_2] : memref<32x8xf32, #tpu.memory_space<vmem>>, vector<32x8xf32>
    %c0_3 = arith.constant 0 : index
    %c0_4 = arith.constant 0 : index
    %2 = vector.load %arg4[%c0_3, %c0_4] : memref<32x1xf32, #tpu.memory_space<vmem>>, vector<32x1xf32>
    %c0_5 = arith.constant 0 : index
    %c0_6 = arith.constant 0 : index
    %3 = vector.load %arg5[%c0_5, %c0_6] : memref<32x32xf32, #tpu.memory_space<vmem>>, vector<32x32xf32>
    %c0_7 = arith.constant 0 : index
    %c0_8 = arith.constant 0 : index
    %4 = vector.load %arg6[%c0_7, %c0_8] : memref<32x1xf32, #tpu.memory_space<vmem>>, vector<32x1xf32>
    %c0_9 = arith.constant 0 : index
    %c0_10 = arith.constant 0 : index
    %5 = vector.load %arg7[%c0_9, %c0_10] : memref<32x32xf32, #tpu.memory_space<vmem>>, vector<32x32xf32>
    %c0_11 = arith.constant 0 : index
    %c0_12 = arith.constant 0 : index
    %6 = vector.load %arg8[%c0_11, %c0_12] : memref<32x1xf32, #tpu.memory_space<vmem>>, vector<32x1xf32>
    %c0_13 = arith.constant 0 : index
    %c0_14 = arith.constant 0 : index
    %7 = vector.load %arg9[%c0_13, %c0_14] : memref<4x32xf32, #tpu.memory_space<vmem>>, vector<4x32xf32>
    %c0_15 = arith.constant 0 : index
    %c0_16 = arith.constant 0 : index
    %8 = vector.load %arg10[%c0_15, %c0_16] : memref<4x1xf32, #tpu.memory_space<vmem>>, vector<4x1xf32>
    %c0_17 = arith.constant 0 : index
    %c0_18 = arith.constant 0 : index
    %9 = vector.load %arg2[%c0_17, %c0_18] : memref<8x512xf32, #tpu.memory_space<vmem>>, vector<8x256xf32>
    %cst = arith.constant dense<0.000000e+00> : vector<32x256xf32>
    %10 = tpu.matmul %1, %9, %cst {dimension_numbers = #tpu.dot_dimension_numbers<[1], [0], [0], [1], [0, 0, 1, 1], [], []>} : vector<32x8xf32>, vector<8x256xf32>, vector<32x256xf32> -> vector<32x256xf32>
    %11 = vector.broadcast %2 : vector<32x1xf32> to vector<32x256xf32>
    %12 = arith.addf %10, %11 : vector<32x256xf32>
    %13 = vector.broadcast %0 : f32 to vector<32x256xf32>
    %14 = arith.mulf %13, %12 : vector<32x256xf32>
    %15 = math.tanh %14 : vector<32x256xf32>
    %cst_19 = arith.constant dense<0.000000e+00> : vector<32x256xf32>
    %16 = tpu.matmul %3, %15, %cst_19 {dimension_numbers = #tpu.dot_dimension_numbers<[1], [0], [0], [1], [0, 0, 1, 1], [], []>} : vector<32x32xf32>, vector<32x256xf32>, vector<32x256xf32> -> vector<32x256xf32>
    %17 = vector.broadcast %4 : vector<32x1xf32> to vector<32x256xf32>
    %18 = arith.addf %16, %17 : vector<32x256xf32>
    %19 = vector.broadcast %0 : f32 to vector<32x256xf32>
    %20 = arith.mulf %19, %18 : vector<32x256xf32>
    %21 = math.tanh %20 : vector<32x256xf32>
    %cst_20 = arith.constant dense<0.000000e+00> : vector<32x256xf32>
    %22 = tpu.matmul %5, %21, %cst_20 {dimension_numbers = #tpu.dot_dimension_numbers<[1], [0], [0], [1], [0, 0, 1, 1], [], []>} : vector<32x32xf32>, vector<32x256xf32>, vector<32x256xf32> -> vector<32x256xf32>
    %23 = vector.broadcast %6 : vector<32x1xf32> to vector<32x256xf32>
    %24 = arith.addf %22, %23 : vector<32x256xf32>
    %25 = vector.broadcast %0 : f32 to vector<32x256xf32>
    %26 = arith.mulf %25, %24 : vector<32x256xf32>
    %27 = math.tanh %26 : vector<32x256xf32>
    %cst_21 = arith.constant dense<0.000000e+00> : vector<4x256xf32>
    %28 = tpu.matmul %7, %27, %cst_21 {dimension_numbers = #tpu.dot_dimension_numbers<[1], [0], [0], [1], [0, 0, 1, 1], [], []>} : vector<4x32xf32>, vector<32x256xf32>, vector<4x256xf32> -> vector<4x256xf32>
    %29 = vector.broadcast %8 : vector<4x1xf32> to vector<4x256xf32>
    %30 = arith.addf %28, %29 : vector<4x256xf32>
    %31 = vector.broadcast %0 : f32 to vector<4x256xf32>
    %32 = arith.mulf %31, %30 : vector<4x256xf32>
    %c0_22 = arith.constant 0 : index
    %c0_23 = arith.constant 0 : index
    %33 = vector.load %arg11[%c0_22, %c0_23] : memref<4x512xf32, #tpu.memory_space<vmem>>, vector<4x256xf32>
    tpu.vector_store %arg11[%c0_22, %c0_23], %32 {strides = array<i32>} : memref<4x512xf32, #tpu.memory_space<vmem>>, vector<4x256xf32>,
    %c0_24 = arith.constant 0 : index
    %c256 = arith.constant 256 : index
    %34 = vector.load %arg2[%c0_24, %c256] : memref<8x512xf32, #tpu.memory_space<vmem>>, vector<8x256xf32>
    %cst_25 = arith.constant dense<0.000000e+00> : vector<32x256xf32>
    %35 = tpu.matmul %1, %34, %cst_25 {dimension_numbers = #tpu.dot_dimension_numbers<[1], [0], [0], [1], [0, 0, 1, 1], [], []>} : vector<32x8xf32>, vector<8x256xf32>, vector<32x256xf32> -> vector<32x256xf32>
    %36 = vector.broadcast %2 : vector<32x1xf32> to vector<32x256xf32>
    %37 = arith.addf %35, %36 : vector<32x256xf32>
    %38 = vector.broadcast %0 : f32 to vector<32x256xf32>
    %39 = arith.mulf %38, %37 : vector<32x256xf32>
    %40 = math.tanh %39 : vector<32x256xf32>
    %cst_26 = arith.constant dense<0.000000e+00> : vector<32x256xf32>
    %41 = tpu.matmul %3, %40, %cst_26 {dimension_numbers = #tpu.dot_dimension_numbers<[1], [0], [0], [1], [0, 0, 1, 1], [], []>} : vector<32x32xf32>, vector<32x256xf32>, vector<32x256xf32> -> vector<32x256xf32>
    %42 = vector.broadcast %4 : vector<32x1xf32> to vector<32x256xf32>
    %43 = arith.addf %41, %42 : vector<32x256xf32>
    %44 = vector.broadcast %0 : f32 to vector<32x256xf32>
    %45 = arith.mulf %44, %43 : vector<32x256xf32>
    %46 = math.tanh %45 : vector<32x256xf32>
    %cst_27 = arith.constant dense<0.000000e+00> : vector<32x256xf32>
    %47 = tpu.matmul %5, %46, %cst_27 {dimension_numbers = #tpu.dot_dimension_numbers<[1], [0], [0], [1], [0, 0, 1, 1], [], []>} : vector<32x32xf32>, vector<32x256xf32>, vector<32x256xf32> -> vector<32x256xf32>
    %48 = vector.broadcast %6 : vector<32x1xf32> to vector<32x256xf32>
    %49 = arith.addf %47, %48 : vector<32x256xf32>
    %50 = vector.broadcast %0 : f32 to vector<32x256xf32>
    %51 = arith.mulf %50, %49 : vector<32x256xf32>
    %52 = math.tanh %51 : vector<32x256xf32>
    %cst_28 = arith.constant dense<0.000000e+00> : vector<4x256xf32>
    %53 = tpu.matmul %7, %52, %cst_28 {dimension_numbers = #tpu.dot_dimension_numbers<[1], [0], [0], [1], [0, 0, 1, 1], [], []>} : vector<4x32xf32>, vector<32x256xf32>, vector<4x256xf32> -> vector<4x256xf32>
    %54 = vector.broadcast %8 : vector<4x1xf32> to vector<4x256xf32>
    %55 = arith.addf %53, %54 : vector<4x256xf32>
    %56 = vector.broadcast %0 : f32 to vector<4x256xf32>
    %57 = arith.mulf %56, %55 : vector<4x256xf32>
    %c0_29 = arith.constant 0 : index
    %c256_30 = arith.constant 256 : index
    %58 = vector.load %arg11[%c0_29, %c256_30] : memref<4x512xf32, #tpu.memory_space<vmem>>, vector<4x256xf32>
    tpu.vector_store %arg11[%c0_29, %c256_30], %57 {strides = array<i32>} : memref<4x512xf32, #tpu.memory_space<vmem>>, vector<4x256xf32>,
    return
  }
  func.func @transform_0(%arg0: i32) -> (i32, i32) {
    %c0_i32 = arith.constant 0 : i32
    %c0_i32_0 = arith.constant 0 : i32
    %c0_i32_1 = arith.constant 0 : i32
    return %c0_i32, %c0_i32_0 : i32, i32
  }
  func.func @transform_1(%arg0: i32) -> (i32, i32) {
    %c0_i32 = arith.constant 0 : i32
    %c0_i32_0 = arith.constant 0 : i32
    return %c0_i32, %arg0 : i32, i32
  }
  func.func @transform_2(%arg0: i32) -> (i32, i32) {
    %c0_i32 = arith.constant 0 : i32
    %c0_i32_0 = arith.constant 0 : i32
    %c0_i32_1 = arith.constant 0 : i32
    return %c0_i32, %c0_i32_0 : i32, i32
  }
  func.func @transform_3(%arg0: i32) -> (i32, i32) {
    %c0_i32 = arith.constant 0 : i32
    %c0_i32_0 = arith.constant 0 : i32
    %c0_i32_1 = arith.constant 0 : i32
    return %c0_i32, %c0_i32_0 : i32, i32
  }
  func.func @transform_4(%arg0: i32) -> (i32, i32) {
    %c0_i32 = arith.constant 0 : i32
    %c0_i32_0 = arith.constant 0 : i32
    %c0_i32_1 = arith.constant 0 : i32
    return %c0_i32, %c0_i32_0 : i32, i32
  }
  func.func @transform_5(%arg0: i32) -> (i32, i32) {
    %c0_i32 = arith.constant 0 : i32
    %c0_i32_0 = arith.constant 0 : i32
    %c0_i32_1 = arith.constant 0 : i32
    return %c0_i32, %c0_i32_0 : i32, i32
  }
  func.func @transform_6(%arg0: i32) -> (i32, i32) {
    %c0_i32 = arith.constant 0 : i32
    %c0_i32_0 = arith.constant 0 : i32
    %c0_i32_1 = arith.constant 0 : i32
    return %c0_i32, %c0_i32_0 : i32, i32
  }
  func.func @transform_7(%arg0: i32) -> (i32, i32) {
    %c0_i32 = arith.constant 0 : i32
    %c0_i32_0 = arith.constant 0 : i32
    %c0_i32_1 = arith.constant 0 : i32
    return %c0_i32, %c0_i32_0 : i32, i32
  }
  func.func @transform_8(%arg0: i32) -> (i32, i32) {
    %c0_i32 = arith.constant 0 : i32
    %c0_i32_0 = arith.constant 0 : i32
    %c0_i32_1 = arith.constant 0 : i32
    return %c0_i32, %c0_i32_0 : i32, i32
  }
  func.func @transform_9(%arg0: i32) -> (i32, i32) {
    %c0_i32 = arith.constant 0 : i32
    %c0_i32_0 = arith.constant 0 : i32
    %c0_i32_1 = arith.constant 0 : i32
    return %c0_i32, %c0_i32_0 : i32, i32
  }
  func.func @transform_10(%arg0: i32) -> (i32, i32) {
    %c0_i32 = arith.constant 0 : i32
    %c0_i32_0 = arith.constant 0 : i32
    return %c0_i32, %arg0 : i32, i32
  }
}

</mosaic_0001>

<bundles_post_ra>
// kernel: tpu_custom_call.1
= control target key start
LH: loop header
LB: loop body
LE: loop exit
PB: predicated region body
PF: predicated region fallthrough
CT: control target
= control target key end

     0   :  { %s2769_s0 = inlined_call_operand.<no memory space> [shape: f32[1,1], index: 0, kind: input, shape index: {}]   ;;  %s2770_s1 = inlined_call_operand.vmem [shape: f32[1024,8], index: 1, kind: input, shape index: {}]   ;;  %s2771_s2 = inlined_call_operand.vmem [shape: f32[32,8], index: 2, kind: input, shape index: {}]   ;;  %s2772_s3 = inlined_call_operand.vmem [shape: f32[32,1], index: 3, kind: input, shape index: {}]   ;;  %s2773_s4 = inlined_call_operand.vmem [shape: f32[32,32], index: 4, kind: input, shape index: {}]   ;;  %s2774_s5 = inlined_call_operand.vmem [shape: f32[32,1], index: 5, kind: input, shape index: {}]   ;;  %s2775_s6 = inlined_call_operand.vmem [shape: f32[32,32], index: 6, kind: input, shape index: {}]   ;;  %s2776_s7 = inlined_call_operand.vmem [shape: f32[32,1], index: 7, kind: input, shape index: {}]   ;;  %s2777_s8 = inlined_call_operand.vmem [shape: f32[4,32], index: 8, kind: input, shape index: {}]   ;;  %s2778_s9 = inlined_call_operand.vmem [shape: f32[4,1], index: 9, kind: input, shape index: {}]   ;;  %s2779_s10 = inlined_call_operand.hbm [shape: f32[4,1024], index: 10, kind: output, shape index: {}]  }
   0x1   :  { %15 = sst [smem:[#allocation2]] %s2769_s0 }
   0x2   :  { %16 = vsyncpa [#allocation4], 0 }
   0x3   :  { %18 = vsyncpa [#allocation4 + $0x1], 0  ;;  %s2203_s15 = smov 0   ;;  %s2205_s16 = smov 0  }
   0x4   :  { %s2207_s17 = smov 0   ;;  %s2209_s18 = smov 0  }
   0x5 LB: > { %s2224_s0 = sadd.s32 4294967295, %s2140_s18   ;;  %s1612_s19 = sadd.s32 4294967294, %s2140_s18   ;;  %s2140_s18 = sphi %s2209_s18, %s2787_s18   ;;  %s2136_s17 = sphi %s2207_s17, %s2786_s17   ;;  %s2132_s16 = sphi %s2205_s16, %s2785_s16   ;;  %s2128_s15 = sphi %s2203_s15, %s2784_s15  }
   0x6   : > { %s2228_s20 = sadd.s32 1, %s2140_s18   ;;  %s246_s21 = sadd.s32 1, %s2136_s17 }
   0x7   : > { %s243_s22 = ssub.s32 %s2140_s18, %s2228_s20  ;;  %p256_p0 = scmp.ne.s32.totalorder %s2136_s17, %s2132_s16 }
   0x8   : > { %p244_p1 = scmp.eq.s32.totalorder %s243_s22, 0  ;;  %p257_p2 = scmp.eq.s32.totalorder %s2224_s0, 1 }
   0x9   : > { %p262_p3 = scmp.ne.s32.totalorder %s2132_s16, %s2128_s15  ;;  %p263_p4 = scmp.eq.s32.totalorder %s1612_s19, 1 }
   0xa   : > { %s2239_s23 = scalar_select %p244_p1, %s2136_s17, %s246_s21  }
   0xb   : > { %p2241_p5 = por %p257_p2, %p256_p0  ;;  %p2245_p6 = por %p263_p4, %p262_p3 }
   0xc   : > { %p1615_p7 = scmp.ge.s32.totalorder %s2140_s18, 1  ;;  %p317_p8 = scmp.lt.s32.totalorder %s2140_s18, 3 }
   0xe   : > { %p318_p9 = pnand %p1615_p7, %p317_p8 }
   0xf   : > { %s1617_s26 = sshll.u32 (!%p318_p9), %s2224_s0, 6  ;;  %vm441_vm0 = vcmask (!%p318_p9), 64512   ;;  %v2255_v0 = vld [vmem:[%s2771_s2] sm:$0xff] (!%p318_p9)  ;;  %v2142_v1 = vmov (!%p318_p9), 0   ;;  %v369_v3 = vld [vmem:[%s2772_s3 + $0x10] sm:$0xff] (!%p318_p9)  ;;  %v368_v4 = vld [vmem:[%s2772_s3 + $0x8] sm:$0xff] (!%p318_p9) }
  0x10   : > { %321 = sbr.rel (%p318_p9) target bundleno = 1871 (0x74f), region = 60  ;;  %p356_p10 = scmp.lt.s32.totalorder (!%p318_p9), %s1617_s26, 127  ;;  %1747 = vmatprep.mubr.msk.f32.mxu0 (!%p318_p9), %vm441_vm0, %v2255_v0  ;;  %1980 = vset.pattern.permute.xlu0 (!%p318_p9), %v2142_v1  ;;  %v367_v2 = vld [vmem:[%s2772_s3] sm:$0xff] (!%p318_p9)  ;;  %v370_v5 = vld [vmem:[%s2772_s3 + $0x18] sm:$0xff] (!%p318_p9)  ;;  %vm2278_vm1 = vmpackc.low (!%p318_p9), %vm441_vm0, %vm441_vm0  ;;  %vm676_vm2 = vcmask (!%p318_p9), 261120  }
  0x11   : > { %423 = vperm.xlu0 (!%p318_p9), %1980, %v367_v2   ;;  %1981 = vset.pattern.permute.xlu1 (!%p318_p9), %v2142_v1  ;;  %v375_v7 = vld [vmem:[%s2774_s5] sm:$0xff] (!%p318_p9)  ;;  %v376_v8 = vld [vmem:[%s2774_s5 + $0x8] sm:$0xff] (!%p318_p9)  ;;  %v377_v18 = vld [vmem:[%s2774_s5 + $0x10] sm:$0xff] (!%p318_p9)  ;;  %s362_s11 = sld [smem:[#allocation2]] (!%p318_p9) }
  0x12   : > { %433 = vperm.xlu1 (!%p318_p9), %1981, %v369_v3   ;;  %v378_v21 = vld [vmem:[%s2774_s5 + $0x18] sm:$0xff] (!%p318_p9)  ;;  %v383_v25 = vld [vmem:[%s2776_s7] sm:$0xff] (!%p318_p9)  ;;  %v384_v27 = vld [vmem:[%s2776_s7 + $0x8] sm:$0xff] (!%p318_p9) }
  0x13   : > { %v385_v28 = vld [vmem:[%s2776_s7 + $0x10] sm:$0xff] (!%p318_p9)  ;;  %v386_v31 = vld [vmem:[%s2776_s7 + $0x18] sm:$0xff] (!%p318_p9)  ;;  %v388_v35 = vld [vmem:[%s2778_s9] sm:$0xf] (!%p318_p9) }
  0x14   : > { %v2376_v1 = vld [vmem:[%s2771_s2 + $0x8] sm:$0xff] (!%p318_p9)  ;;  %v2385_v2 = vld [vmem:[%s2771_s2 + $0x10] sm:$0xff] (!%p318_p9)  ;;  %v2394_v3 = vld [vmem:[%s2771_s2 + $0x18] sm:$0xff] (!%p318_p9) }
  0x15   : > { %428 = vperm.xlu0 (!%p318_p9), %1980, %v368_v4   ;;  %v2143_v4 = vmov (!%p318_p9), 0.0  }
  0x16   : > { %438 = vperm.xlu1 (!%p318_p9), %1981, %v370_v5   ;;  %753 = vmatprep.mubr.f32.mxu1 (!%p318_p9), %v2143_v4 }
  0x17   : > { %s2789_s26 = smov (!%p356_p10, %s1617_s26), 127 }
  0x18   : > { %s1618_s22 = sshll.u32 %s2789_s26, 3  ;;  %s1714_s26 = sshll.u32 %s2224_s0, 8 }
  0x19   : > { %s2274_s29 = scalar_lea.vmem %s2770_s1, %s1618_s22  ;;  %658 = vperm.xlu0 %1980, %v375_v7   ;;  %s2724_s14 = scalar_lea.hbm %s2779_s10, %s1714_s26 }
  0x1a   : > { %v405_v9 = vld [vmem:[%s2274_s29 + $0x80] sm:$0xff]  ;;  %v406_v10 = vld [vmem:[%s2274_s29 + $0x88] sm:$0xff]  ;;  %v407_v14 = vld [vmem:[%s2274_s29 + $0x90] sm:$0xff]  ;;  %663 = vperm.xlu1 %1981, %v376_v8   ;;  %v2406_v8 = vstv %s362_s11  ;;  %s2144_s0 = smov [#allocation3]  }
  0x1b   : > { %v389_v11 = vld [vmem:[%s2274_s29] sm:$0xff]  ;;  %v1795_v12 = vpack.c.bf16 %v406_v10, %v405_v9  ;;  %v390_v13 = vld [vmem:[%s2274_s29 + $0x8] sm:$0xff]  ;;  %v408_v15 = vld [vmem:[%s2274_s29 + $0x98] sm:$0xff]  ;;  %s2082_s22 = sshll.u32 %s2144_s0, 4  ;;  %s2083_s22 = int_to_ptr.vmem [resolvable:$false] %s2082_s22 }
  0x1c   : > { %v1798_v16 = vpack.c.bf16 %v390_v13, %v389_v11  ;;  %v1801_v17 = vpack.c.bf16 %v408_v15, %v407_v14  ;;  %v391_v19 = vld [vmem:[%s2274_s29 + $0x10] sm:$0xff]  ;;  %v392_v20 = vld [vmem:[%s2274_s29 + $0x18] sm:$0xff]  ;;  %v409_v22 = vld [vmem:[%s2274_s29 + $0xa0] sm:$0xff]  ;;  %s2084_s27 = scalar_lea.vmem %s2083_s22, 512 }
  0x1d   : > { %1797 = vmatprep.subr.msk.bf16.mxu0 %vm2278_vm1, %v1795_v12  ;;  %v410_v23 = vld [vmem:[%s2274_s29 + $0xa8] sm:$0xff]  ;;  %668 = vperm.xlu0 %1980, %v377_v18   ;;  %v1804_v24 = vpack.c.bf16 %v392_v20, %v391_v19  ;;  %v393_v29 = vld [vmem:[%s2274_s29 + $0x20] sm:$0xff]  ;;  %v411_v32 = vld [vmem:[%s2274_s29 + $0xb0] sm:$0xff] }
  0x1e   : > { %1800 = vmatpush3.bf16.xpose.msk.msra.mxu0 %vm2278_vm1, %v1798_v16  ;;  %673 = vperm.xlu1 %1981, %v378_v21   ;;  %v1807_v26 = vpack.c.bf16 %v410_v23, %v409_v22  ;;  %v394_v30 = vld [vmem:[%s2274_s29 + $0x28] sm:$0xff]  ;;  %v412_v33 = vld [vmem:[%s2274_s29 + $0xb8] sm:$0xff]  ;;  %v395_v37 = vld [vmem:[%s2274_s29 + $0x30] sm:$0xff] }
  0x1f   : > { %1803 = vmatprep.subr.msk.bf16.mxu0 %vm2278_vm1, %v1801_v17  ;;  %v1810_v34 = vpack.c.bf16 %v394_v30, %v393_v29  ;;  %v1813_v36 = vpack.c.bf16 %v412_v33, %v411_v32  ;;  %v396_v38 = vld [vmem:[%s2274_s29 + $0x38] sm:$0xff]  ;;  %v413_v39 = vld [vmem:[%s2274_s29 + $0xc0] sm:$0xff]  ;;  %v414_v40 = vld [vmem:[%s2274_s29 + $0xc8] sm:$0xff] }
  0x20   : > { %v1816_v41 = vpack.c.bf16 %v396_v38, %v395_v37  ;;  %v1819_v42 = vpack.c.bf16 %v414_v40, %v413_v39  ;;  %v397_v43 = vld [vmem:[%s2274_s29 + $0x40] sm:$0xff]  ;;  %v398_v44 = vld [vmem:[%s2274_s29 + $0x48] sm:$0xff]  ;;  %v415_v45 = vld [vmem:[%s2274_s29 + $0xd0] sm:$0xff] }
  0x21   : > { %796 = vperm.xlu0 %1980, %v383_v25   ;;  %v416_v46 = vld [vmem:[%s2274_s29 + $0xd8] sm:$0xff]  ;;  %v1822_v47 = vpack.c.bf16 %v398_v44, %v397_v43  ;;  %v399_v49 = vld [vmem:[%s2274_s29 + $0x50] sm:$0xff]  ;;  %v417_v51 = vld [vmem:[%s2274_s29 + $0xe0] sm:$0xff] }
  0x22   : > { %801 = vperm.xlu1 %1981, %v384_v27   ;;  %v1825_v48 = vpack.c.bf16 %v416_v46, %v415_v45  ;;  %v400_v50 = vld [vmem:[%s2274_s29 + $0x58] sm:$0xff]  ;;  %v418_v52 = vld [vmem:[%s2274_s29 + $0xe8] sm:$0xff]  ;;  %v401_v55 = vld [vmem:[%s2274_s29 + $0x60] sm:$0xff] }
  0x23   : > { %v1828_v53 = vpack.c.bf16 %v400_v50, %v399_v49  ;;  %v1831_v54 = vpack.c.bf16 %v418_v52, %v417_v51  ;;  %v402_v56 = vld [vmem:[%s2274_s29 + $0x68] sm:$0xff]  ;;  %v419_v57 = vld [vmem:[%s2274_s29 + $0xf0] sm:$0xff]  ;;  %v420_v58 = vld [vmem:[%s2274_s29 + $0xf8] sm:$0xff] }
  0x24   : > { %v1834_v59 = vpack.c.bf16 %v402_v56, %v401_v55  ;;  %v1837_v60 = vpack.c.bf16 %v420_v58, %v419_v57  ;;  %v403_v61 = vld [vmem:[%s2274_s29 + $0x70] sm:$0xff]  ;;  %v404_v62 = vld [vmem:[%s2274_s29 + $0x78] sm:$0xff] }
  0x25   : > { %806 = vperm.xlu0 %1980, %v385_v28   ;;  %v1840_v63 = vpack.c.bf16 %v404_v62, %v403_v61  ;;  %v2449_v49 = vld [vmem:[%s2773_s4 + $0x10] sm:$0xff]  ;;  %v2457_v50 = vld [vmem:[%s2773_s4 + $0x18] sm:$0xff] }
  0x26   : > { %1806 = vmatpush3.bf16.xpose.msk.msra.mxu0 %vm2278_vm1, %v1804_v24  ;;  %811 = vperm.xlu1 %1981, %v386_v31  }
  0x27   : > { %1809 = vmatprep.subr.msk.bf16.mxu0 %vm2278_vm1, %v1807_v26 }
  0x29   : > { %933 = vperm.xlu0 %1980, %v388_v35  }
  0x2e   : > { %1812 = vmatpush3.bf16.xpose.msk.msra.mxu0 %vm2278_vm1, %v1810_v34 }
  0x2f   : > { %1815 = vmatprep.subr.msk.bf16.mxu0 %vm2278_vm1, %v1813_v36 }
  0x36   : > { %1818 = vmatpush3.bf16.xpose.msk.msra.mxu0 %vm2278_vm1, %v1816_v41 }
  0x37   : > { %1821 = vmatprep.subr.msk.bf16.mxu0 %vm2278_vm1, %v1819_v42 }
  0x3e   : > { %1824 = vmatpush3.bf16.xpose.msk.msra.mxu0 %vm2278_vm1, %v1822_v47  ;;  %v2433_v47 = vld [vmem:[%s2773_s4] sm:$0xff] }
  0x3f   : > { %1827 = vmatprep.subr.msk.bf16.mxu0 %vm2278_vm1, %v1825_v48  ;;  %v2441_v48 = vld [vmem:[%s2773_s4 + $0x8] sm:$0xff] }
  0x46   : > { %1830 = vmatpush3.bf16.xpose.msk.msra.mxu0 %vm2278_vm1, %v1828_v53 }
  0x47   : > { %1833 = vmatprep.subr.msk.bf16.mxu0 %vm2278_vm1, %v1831_v54 }
  0x4e   : > { %1836 = vmatpush3.bf16.xpose.msk.msra.mxu0 %vm2278_vm1, %v1834_v59 }
  0x4f   : > { %1839 = vmatprep.subr.msk.bf16.mxu0 %vm2278_vm1, %v1837_v60 }
  0x56   : > { %1842 = vmatpush3.bf16.xpose.msk.msra.mxu0 %vm2278_vm1, %v1840_v63 }
  0x5d   : > { %1748 = vmatmul.mubr.msk.f32.vlgmr.msra.gmra.mrb[0].mxu0 %vm441_vm0, %v2255_v0 }
  0x5e   : > { %1749 = vmatprep.mubr.msk.f32.mxu0 %vm441_vm0, %v2376_v1 }
  0x61   : > { %1750 = vmatmul.mubr.msk.f32.gmra.mrb[2].mxu0 %vm441_vm0, %v2376_v1 }
  0x62   : > { %1751 = vmatprep.mubr.msk.f32.mxu0 %vm441_vm0, %v2385_v2 }
  0x65   : > { %1752 = vmatmul.mubr.msk.f32.gmra.mrb[4].mxu0 %vm441_vm0, %v2385_v2 }
  0x66   : > { %1753 = vmatprep.mubr.msk.f32.mxu0 %vm441_vm0, %v2394_v3 }
  0x69   : > { %1754 = vmatmul.mubr.msk.f32.gmra.mrb[6].mxu0 %vm441_vm0, %v2394_v3 }
  0x6a   : > { %1314 = vmatprep.mubr.f32.mxu0 %v2143_v4 }
  0x90   : > { %v2404_v5 = vpop.permute.xlu0 %423 }
  0x91   : > { %v2415_v18 = vpop.permute.xlu1 %433 }
  0x94   : > { %v2411_v13 = vpop.permute.xlu0 %428 }
  0x95   : > { %v2423_v27 = vpop.permute.xlu1 %438 }
  0x98   : > { %v2462_v51 = vpop.permute.xlu0 %658 }
  0x99   : > { %v2467_v57 = vpop.permute.xlu1 %663 }
 0x130   : > { %v616_v7 = vpop.f32.mrb[0].mxu0 }
 0x131   : > { %v617_v9 = vadd.f32 %v616_v7, %v2404_v5  ;;  %v618_v10 = vpop.f32.mrb[1].mxu0  ;;  %v2473_v7 = vpop.permute.xlu0 %668 }
 0x132   : > { %v619_v11 = vadd.f32 %v618_v10, %v2404_v5 }
 0x133   : > { %v640_v12 = vmul.f32 %v2406_v8, %v617_v9 }
 0x134   : > { %v641_v14 = vmul.f32 %v2406_v8, %v619_v11  ;;  %v622_v15 = vpop.f32.mrb[2].mxu0 }
 0x135   : > { %v623_v16 = vadd.f32 %v622_v15, %v2411_v13  ;;  %v624_v17 = vpop.f32.mrb[3].mxu0  ;;  %1982 = vtanh.f32 %v640_v12 }
 0x136   : > { %v625_v19 = vadd.f32 %v624_v17, %v2411_v13  ;;  %1984 = vtanh.f32 %v641_v14 }
 0x137   : > { %v642_v20 = vmul.f32 %v2406_v8, %v623_v16  ;;  %v2479_v16 = vpop.permute.xlu1 %673 }
 0x138   : > { %v643_v21 = vmul.f32 %v2406_v8, %v625_v19  ;;  %v628_v22 = vpop.f32.mrb[4].mxu0 }
 0x139   : > { %1986 = vtanh.f32 %v642_v20  ;;  %v629_v23 = vadd.f32 %v628_v22, %v2415_v18  ;;  %v630_v24 = vpop.f32.mrb[5].mxu0 }
 0x13a   : > { %1988 = vtanh.f32 %v643_v21  ;;  %v631_v25 = vadd.f32 %v630_v24, %v2415_v18 }
 0x13b   : > { %v644_v26 = vmul.f32 %v2406_v8, %v629_v23 }
 0x13c   : > { %v645_v28 = vmul.f32 %v2406_v8, %v631_v25  ;;  %v634_v29 = vpop.f32.mrb[6].mxu0 }
 0x13d   : > { %v635_v30 = vadd.f32 %v634_v29, %v2423_v27  ;;  %v636_v31 = vpop.f32.mrb[7].mxu0  ;;  %1990 = vtanh.f32 %v644_v26 }
 0x13e   : > { %v637_v32 = vadd.f32 %v636_v31, %v2423_v27  ;;  %1992 = vtanh.f32 %v645_v28 }
 0x13f   : > { %v646_v33 = vmul.f32 %v2406_v8, %v635_v30  ;;  %v1983_v35 = vpop.eup %1982 }
 0x140   : > { %v647_v34 = vmul.f32 %v2406_v8, %v637_v32  ;;  %v1985_v36 = vpop.eup %1984 }
 0x141   : > { %1994 = vtanh.f32 %v646_v33 }
 0x142   : > { %1996 = vtanh.f32 %v647_v34 }
 0x143   : > { %v1987_v37 = vpop.eup %1986 }
 0x144   : > { %v1989_v38 = vpop.eup %1988  ;;  %v1845_v39 = vpack.c.bf16 %v1987_v37, %v1983_v35 }
 0x145   : > { %v1843_v40 = vpack.c.bf16 %v1989_v38, %v1985_v36  ;;  %v2489_v38 = vld [vmem:[%s2775_s6] sm:$0xff] }
 0x147   : > { %1844 = vmatprep.subr.bf16.mxu1 %v1843_v40  ;;  %v1991_v41 = vpop.eup %1990  ;;  %v2505_v40 = vld [vmem:[%s2775_s6 + $0x10] sm:$0xff] }
 0x148   : > { %1846 = vmatpush1.bf16.msra.mxu1 %v1845_v39  ;;  %v1993_v42 = vpop.eup %1992  ;;  %v2497_v39 = vld [vmem:[%s2775_s6 + $0x8] sm:$0xff] }
 0x14b   : > { %v1995_v43 = vpop.eup %1994 }
 0x14c   : > { %v1997_v44 = vpop.eup %1996  ;;  %v1849_v45 = vpack.c.bf16 %v1995_v43, %v1991_v41  ;;  %v2513_v41 = vld [vmem:[%s2775_s6 + $0x18] sm:$0xff] }
 0x14d   : > { %v1847_v46 = vpack.c.bf16 %v1997_v44, %v1993_v42  ;;  %v2518_v42 = vpop.permute.xlu0 %796 }
 0x14f   : > { %1848 = vmatprep.subr.bf16.mxu1 %v1847_v46 }
 0x150   : > { %1850 = vmatpush1.bf16.msra.mxu1 %v1849_v45 }
 0x153   : > { %1655 = vmatmul.mubr.msk.f32.vlgmr.msra.gmra.mrb[0].mxu1 %vm676_vm2, %v2433_v47 }
 0x154   : > { %759 = vmatprep.mubr.f32.mxu1 %v2143_v4 }
 0x157   : > { %1656 = vmatmul.mubr.msk.f32.gmra.mrb[2].mxu1 %vm676_vm2, %v2441_v48 }
 0x158   : > { %765 = vmatprep.mubr.f32.mxu1 %v2143_v4 }
 0x15b   : > { %1657 = vmatmul.mubr.msk.f32.gmra.mrb[4].mxu1 %vm676_vm2, %v2449_v49 }
 0x15c   : > { %771 = vmatprep.mubr.f32.mxu1 %v2143_v4 }
 0x15f   : > { %1658 = vmatmul.mubr.msk.f32.gmra.mrb[6].mxu1 %vm676_vm2, %v2457_v50 }
 0x160   : > { %890 = vmatprep.mubr.f32.mxu1 %v2143_v4 }
 0x226   : > { %v755_v52 = vpop.f32.mrb[0].mxu1 }
 0x227   : > { %v756_v53 = vadd.f32 %v755_v52, %v2462_v51  ;;  %v757_v54 = vpop.f32.mrb[1].mxu1 }
 0x228   : > { %v758_v55 = vadd.f32 %v757_v54, %v2462_v51 }
 0x229   : > { %v778_v56 = vmul.f32 %v756_v53, %v2406_v8  ;;  %v2523_v53 = vpop.permute.xlu1 %801 }
 0x22a   : > { %v779_v58 = vmul.f32 %v758_v55, %v2406_v8  ;;  %v761_v59 = vpop.f32.mrb[2].mxu1 }
 0x22b   : > { %v762_v60 = vadd.f32 %v761_v59, %v2467_v57  ;;  %v763_v61 = vpop.f32.mrb[3].mxu1  ;;  %1998 = vtanh.f32 %v778_v56 }
 0x22c   : > { %v764_v62 = vadd.f32 %v763_v61, %v2467_v57  ;;  %2000 = vtanh.f32 %v779_v58  ;;  %v2529_v61 = vpop.permute.xlu0 %806 }
 0x22d   : > { %v780_v63 = vmul.f32 %v762_v60, %v2406_v8 }
 0x22e   : > { %v781_v9 = vmul.f32 %v764_v62, %v2406_v8  ;;  %v767_v10 = vpop.f32.mrb[4].mxu1 }
 0x22f   : > { %2002 = vtanh.f32 %v780_v63  ;;  %v768_v11 = vadd.f32 %v767_v10, %v2473_v7  ;;  %v769_v12 = vpop.f32.mrb[5].mxu1 }
 0x230   : > { %2004 = vtanh.f32 %v781_v9  ;;  %v770_v14 = vadd.f32 %v769_v12, %v2473_v7 }
 0x231   : > { %v782_v15 = vmul.f32 %v768_v11, %v2406_v8 }
 0x232   : > { %v783_v17 = vmul.f32 %v770_v14, %v2406_v8  ;;  %v773_v19 = vpop.f32.mrb[6].mxu1  ;;  %v2535_v14 = vpop.permute.xlu1 %811 }
 0x233   : > { %v774_v20 = vadd.f32 %v773_v19, %v2479_v16  ;;  %v775_v21 = vpop.f32.mrb[7].mxu1  ;;  %2006 = vtanh.f32 %v782_v15 }
 0x234   : > { %v776_v22 = vadd.f32 %v775_v21, %v2479_v16  ;;  %2008 = vtanh.f32 %v783_v17 }
 0x235   : > { %v784_v23 = vmul.f32 %v774_v20, %v2406_v8  ;;  %v1999_v25 = vpop.eup %1998 }
 0x236   : > { %v785_v24 = vmul.f32 %v776_v22, %v2406_v8  ;;  %v2001_v26 = vpop.eup %2000 }
 0x237   : > { %2010 = vtanh.f32 %v784_v23 }
 0x238   : > { %2012 = vtanh.f32 %v785_v24 }
 0x239   : > { %v2003_v28 = vpop.eup %2002 }
 0x23a   : > { %v2005_v29 = vpop.eup %2004  ;;  %v1853_v30 = vpack.c.bf16 %v2003_v28, %v1999_v25 }
 0x23b   : > { %v1851_v31 = vpack.c.bf16 %v2005_v29, %v2001_v26 }
 0x23d   : > { %1852 = vmatprep.subr.bf16.mxu1 %v1851_v31  ;;  %v2007_v32 = vpop.eup %2006 }
 0x23e   : > { %1854 = vmatpush1.bf16.msra.mxu1 %v1853_v30  ;;  %v2009_v33 = vpop.eup %2008 }
 0x241   : > { %v2011_v34 = vpop.eup %2010 }
 0x242   : > { %v2013_v35 = vpop.eup %2012  ;;  %v1857_v36 = vpack.c.bf16 %v2011_v34, %v2007_v32  ;;  %v1034_v34 = vld [vmem:[%s2274_s29 + $0x188] sm:$0xff] }
 0x243   : > { %v1855_v37 = vpack.c.bf16 %v2013_v35, %v2009_v33  ;;  %v1033_v33 = vld [vmem:[%s2274_s29 + $0x180] sm:$0xff] }
 0x245   : > { %1856 = vmatprep.subr.bf16.mxu1 %v1855_v37 }
 0x246   : > { %1858 = vmatpush1.bf16.msra.mxu1 %v1857_v36 }
 0x249   : > { %1659 = vmatmul.mubr.msk.f32.vlgmr.msra.gmra.mrb[8].mxu1 %vm676_vm2, %v2489_v38 }
 0x24a   : > { %896 = vmatprep.mubr.f32.mxu1 %v2143_v4 }
 0x24d   : > { %1660 = vmatmul.mubr.msk.f32.gmra.mrb[10].mxu1 %vm676_vm2, %v2497_v39 }
 0x24e   : > { %902 = vmatprep.mubr.f32.mxu1 %v2143_v4 }
 0x251   : > { %1661 = vmatmul.mubr.msk.f32.gmra.mrb[12].mxu1 %vm676_vm2, %v2505_v40 }
 0x252   : > { %908 = vmatprep.mubr.f32.mxu1 %v2143_v4 }
 0x255   : > { %1662 = vmatmul.mubr.msk.f32.gmra.mrb[14].mxu1 %vm676_vm2, %v2513_v41 }
 0x256   : > { %1003 = vmatprep.mubr.f32.mxu1 %v2143_v4 }
 0x31c   : > { %v892_v43 = vpop.f32.mrb[8].mxu1 }
 0x31d   : > { %v893_v44 = vadd.f32 %v892_v43, %v2518_v42  ;;  %v894_v45 = vpop.f32.mrb[9].mxu1 }
 0x31e   : > { %v895_v46 = vadd.f32 %v894_v45, %v2518_v42  ;;  %v2547_v45 = vld [vmem:[%s2777_s8] sm:$0xf] }
 0x31f   : > { %v915_v52 = vmul.f32 %v893_v44, %v2406_v8  ;;  %v1867_v44 = vpack.c.bf16 %v1034_v34, %v1033_v33  ;;  %v1027_v34 = vld [vmem:[%s2274_s29 + $0x150] sm:$0xff] }
 0x320   : > { %v916_v54 = vmul.f32 %v895_v46, %v2406_v8  ;;  %v898_v55 = vpop.f32.mrb[10].mxu1  ;;  %v1017_v46 = vld [vmem:[%s2274_s29 + $0x100] sm:$0xff] }
 0x321   : > { %v899_v56 = vadd.f32 %v898_v55, %v2523_v53  ;;  %v900_v58 = vpop.f32.mrb[11].mxu1  ;;  %2014 = vtanh.f32 %v915_v52  ;;  %v1018_v52 = vld [vmem:[%s2274_s29 + $0x108] sm:$0xff]  ;;  %v1036_v55 = vld [vmem:[%s2274_s29 + $0x198] sm:$0xff] }
 0x322   : > { %v901_v59 = vadd.f32 %v900_v58, %v2523_v53  ;;  %2016 = vtanh.f32 %v916_v54  ;;  %v1035_v54 = vld [vmem:[%s2274_s29 + $0x190] sm:$0xff] }
 0x323   : > { %v917_v60 = vmul.f32 %v899_v56, %v2406_v8  ;;  %v1870_v56 = vpack.c.bf16 %v1018_v52, %v1017_v46  ;;  %v1873_v58 = vpack.c.bf16 %v1036_v55, %v1035_v54  ;;  %v1029_v46 = vld [vmem:[%s2274_s29 + $0x160] sm:$0xff]  ;;  %v1030_v52 = vld [vmem:[%s2274_s29 + $0x168] sm:$0xff]  ;;  %v1047_v54 = vld [vmem:[%s2274_s29 + $0x1f0] sm:$0xff] }
 0x324   : > { %v918_v62 = vmul.f32 %v901_v59, %v2406_v8  ;;  %v904_v63 = vpop.f32.mrb[12].mxu1  ;;  %v1019_v59 = vld [vmem:[%s2274_s29 + $0x110] sm:$0xff]  ;;  %v1048_v55 = vld [vmem:[%s2274_s29 + $0x1f8] sm:$0xff] }
 0x325   : > { %2018 = vtanh.f32 %v917_v60  ;;  %v905_v9 = vadd.f32 %v904_v63, %v2529_v61  ;;  %v906_v10 = vpop.f32.mrb[13].mxu1  ;;  %v1020_v60 = vld [vmem:[%s2274_s29 + $0x118] sm:$0xff]  ;;  %v1038_v63 = vld [vmem:[%s2274_s29 + $0x1a8] sm:$0xff] }
 0x326   : > { %2020 = vtanh.f32 %v918_v62  ;;  %v907_v11 = vadd.f32 %v906_v10, %v2529_v61  ;;  %v1037_v62 = vld [vmem:[%s2274_s29 + $0x1a0] sm:$0xff] }
 0x327   : > { %v919_v12 = vmul.f32 %v905_v9, %v2406_v8  ;;  %v1876_v9 = vpack.c.bf16 %v1020_v60, %v1019_v59  ;;  %v1879_v10 = vpack.c.bf16 %v1038_v63, %v1037_v62  ;;  %v1031_v59 = vld [vmem:[%s2274_s29 + $0x170] sm:$0xff]  ;;  %v1032_v60 = vld [vmem:[%s2274_s29 + $0x178] sm:$0xff] }
 0x328   : > { %v920_v15 = vmul.f32 %v907_v11, %v2406_v8  ;;  %v910_v17 = vpop.f32.mrb[14].mxu1  ;;  %v1021_v11 = vld [vmem:[%s2274_s29 + $0x120] sm:$0xff]  ;;  %v1912_v62 = vpack.c.bf16 %v1032_v60, %v1031_v59 }
 0x329   : > { %v911_v19 = vadd.f32 %v910_v17, %v2535_v14  ;;  %v912_v20 = vpop.f32.mrb[15].mxu1  ;;  %2022 = vtanh.f32 %v919_v12  ;;  %v1022_v12 = vld [vmem:[%s2274_s29 + $0x128] sm:$0xff]  ;;  %v1040_v17 = vld [vmem:[%s2274_s29 + $0x1b8] sm:$0xff] }
 0x32a   : > { %v913_v21 = vadd.f32 %v912_v20, %v2535_v14  ;;  %2024 = vtanh.f32 %v920_v15  ;;  %v1039_v15 = vld [vmem:[%s2274_s29 + $0x1b0] sm:$0xff] }
 0x32b   : > { %v921_v22 = vmul.f32 %v911_v19, %v2406_v8  ;;  %v2015_v24 = vpop.eup %2014  ;;  %v1882_v19 = vpack.c.bf16 %v1022_v12, %v1021_v11  ;;  %v1885_v20 = vpack.c.bf16 %v1040_v17, %v1039_v15 }
 0x32c   : > { %v922_v23 = vmul.f32 %v913_v21, %v2406_v8  ;;  %v2017_v25 = vpop.eup %2016  ;;  %v1023_v21 = vld [vmem:[%s2274_s29 + $0x130] sm:$0xff] }
 0x32d   : > { %2026 = vtanh.f32 %v921_v22  ;;  %v1024_v22 = vld [vmem:[%s2274_s29 + $0x138] sm:$0xff] }
 0x32e   : > { %2028 = vtanh.f32 %v922_v23  ;;  %v1041_v23 = vld [vmem:[%s2274_s29 + $0x1c0] sm:$0xff] }
 0x32f   : > { %v2019_v26 = vpop.eup %2018 }
 0x330   : > { %v2021_v28 = vpop.eup %2020  ;;  %v1861_v29 = vpack.c.bf16 %v2019_v26, %v2015_v24  ;;  %v1042_v24 = vld [vmem:[%s2274_s29 + $0x1c8] sm:$0xff] }
 0x331   : > { %v1859_v30 = vpack.c.bf16 %v2021_v28, %v2017_v25  ;;  %v1888_v25 = vpack.c.bf16 %v1024_v22, %v1023_v21  ;;  %v1891_v26 = vpack.c.bf16 %v1042_v24, %v1041_v23  ;;  %v1025_v28 = vld [vmem:[%s2274_s29 + $0x140] sm:$0xff] }
 0x333   : > { %1860 = vmatprep.subr.bf16.mxu1 %v1859_v30  ;;  %v2023_v31 = vpop.eup %2022  ;;  %v1043_v30 = vld [vmem:[%s2274_s29 + $0x1d0] sm:$0xff] }
 0x334   : > { %1862 = vmatpush1.bf16.msra.mxu1 %v1861_v29  ;;  %v2025_v32 = vpop.eup %2024  ;;  %v1026_v29 = vld [vmem:[%s2274_s29 + $0x148] sm:$0xff] }
 0x337   : > { %v2027_v35 = vpop.eup %2026 }
 0x338   : > { %v2029_v36 = vpop.eup %2028  ;;  %v1865_v37 = vpack.c.bf16 %v2027_v35, %v2023_v31  ;;  %v1044_v31 = vld [vmem:[%s2274_s29 + $0x1d8] sm:$0xff] }
 0x339   : > { %v1863_v43 = vpack.c.bf16 %v2029_v36, %v2025_v32  ;;  %v1894_v32 = vpack.c.bf16 %v1026_v29, %v1025_v28  ;;  %v1897_v33 = vpack.c.bf16 %v1044_v31, %v1043_v30  ;;  %v1028_v35 = vld [vmem:[%s2274_s29 + $0x158] sm:$0xff]  ;;  %v1045_v36 = vld [vmem:[%s2274_s29 + $0x1e0] sm:$0xff] }
 0x33b   : > { %1864 = vmatprep.subr.bf16.mxu1 %v1863_v43  ;;  %v1900_v43 = vpack.c.bf16 %v1028_v35, %v1027_v34 }
 0x33c   : > { %1866 = vmatpush1.bf16.msra.mxu1 %v1865_v37  ;;  %v1046_v37 = vld [vmem:[%s2274_s29 + $0x1e8] sm:$0xff]  ;;  %s352_s29 = sand.u32 1, %s2132_s16  }
 0x33d   : > { %1869 = vmatprep.subr.msk.bf16.mxu1 %vm2278_vm1, %v1867_v44  ;;  %v1903_v44 = vpack.c.bf16 %v1046_v37, %v1045_v36  ;;  %s1616_s28 = sshll.u32 %s352_s29, 4  ;;  %s1539_s19 = scalar_lea.sflag [#allocation4], %s352_s29 }
 0x33e   : > { %s2638_s30 = scalar_lea.vmem [#allocation3], %s1616_s28 }
 0x33f   : > { %1663 = vmatmul.mubr.msk.f32.vlgmr.msra.gmra.mrb[16].mxu1 %vm676_vm2, %v2547_v45  ;;  %s1553_s11 = sshll.u32 %s2638_s30, 4  ;;  %s2726_s11 = int_to_ptr.vmem [resolvable:$true] %s1553_s11 }
 0x340   : > { %1787 = vmatprep.mubr.msk.f32.mxu1 %vm441_vm0, %v2255_v0  ;;  %s2078_s21 = scalar_lea.vmem %s2726_s11, 256  ;;  %p2085_p0 = scmp.lt.s32.totalorder %s2726_s11, %s2083_s22 }
 0x341   : > { %p2079_p11 = scmp.ne.s32.totalorder %s2726_s11, %s2078_s21  ;;  %p2086_p1 = scmp.lt.s32.totalorder %s2084_s27, %s2078_s21 }
 0x343   : > { %p2080_p12 = pnand %p2079_p11, %p2241_p5  ;;  %p2087_p2 = por %p2086_p1, %p2085_p0 }
 0x345   : > { %1872 = vmatpush3.bf16.xpose.msk.msra.mxu1 %vm2278_vm1, %v1870_v56  ;;  %v1906_v56 = vpack.c.bf16 %v1030_v52, %v1029_v46  ;;  %p2081_p13 = pneg %p2080_p12 }
 0x346   : > { %1875 = vmatprep.subr.msk.bf16.mxu1 %vm2278_vm1, %v1873_v58  ;;  %v1909_v58 = vpack.c.bf16 %v1048_v55, %v1047_v54 }
 0x347   : > { %p2088_p3 = pnand %p2087_p2, %p2081_p13 }
 0x34d   : > { %1878 = vmatpush3.bf16.xpose.msk.msra.mxu1 %vm2278_vm1, %v1876_v9 }
 0x34e   : > { %1881 = vmatprep.subr.msk.bf16.mxu1 %vm2278_vm1, %v1879_v10 }
 0x355   : > { %1884 = vmatpush3.bf16.xpose.msk.msra.mxu1 %vm2278_vm1, %v1882_v19 }
 0x356   : > { %1887 = vmatprep.subr.msk.bf16.mxu1 %vm2278_vm1, %v1885_v20 }
 0x35d   : > { %1890 = vmatpush3.bf16.xpose.msk.msra.mxu1 %vm2278_vm1, %v1888_v25 }
 0x35e   : > { %1893 = vmatprep.subr.msk.bf16.mxu1 %vm2278_vm1, %v1891_v26 }
 0x365   : > { %1896 = vmatpush3.bf16.xpose.msk.msra.mxu1 %vm2278_vm1, %v1894_v32 }
 0x366   : > { %1899 = vmatprep.subr.msk.bf16.mxu1 %vm2278_vm1, %v1897_v33 }
 0x36d   : > { %1902 = vmatpush3.bf16.xpose.msk.msra.mxu1 %vm2278_vm1, %v1900_v43 }
 0x36e   : > { %1905 = vmatprep.subr.msk.bf16.mxu1 %vm2278_vm1, %v1903_v44 }
 0x375   : > { %1908 = vmatpush3.bf16.xpose.msk.msra.mxu1 %vm2278_vm1, %v1906_v56 }
 0x376   : > { %1911 = vmatprep.subr.msk.bf16.mxu1 %vm2278_vm1, %v1909_v58 }
 0x37d   : > { %1914 = vmatpush3.bf16.xpose.msk.msra.mxu1 %vm2278_vm1, %v1912_v62 }
 0x384   : > { %1788 = vmatmul.mubr.msk.f32.vlgmr.msra.gmra.mrb[18].mxu1 %vm441_vm0, %v2255_v0  ;;  %v2630_v0 = vpop.permute.xlu0 %933 }
 0x385   : > { %1789 = vmatprep.mubr.msk.f32.mxu1 %vm441_vm0, %v2376_v1 }
 0x388   : > { %1790 = vmatmul.mubr.msk.f32.gmra.mrb[20].mxu1 %vm441_vm0, %v2376_v1 }
 0x389   : > { %1791 = vmatprep.mubr.msk.f32.mxu1 %vm441_vm0, %v2385_v2 }
 0x38c   : > { %1792 = vmatmul.mubr.msk.f32.gmra.mrb[22].mxu1 %vm441_vm0, %v2385_v2 }
 0x38d   : > { %1793 = vmatprep.mubr.msk.f32.mxu1 %vm441_vm0, %v2394_v3 }
 0x390   : > { %1794 = vmatmul.mubr.msk.f32.gmra.mrb[24].mxu1 %vm441_vm0, %v2394_v3 }
 0x412   : > { %v1005_v6 = vpop.f32.mrb[16].mxu1 }
 0x413   : > { %v1006_v63 = vadd.f32 %v1005_v6, %v2630_v0  ;;  %v1007_v9 = vpop.f32.mrb[17].mxu1 }
 0x414   : > { %v1008_v1 = vadd.f32 %v1007_v9, %v2630_v0 }
 0x415   : > { %v1010_v10 = vmul.f32 %v1006_v63, %v2406_v8 }
 0x416   : > { %v1011_v2 = vmul.f32 %v1008_v1, %v2406_v8 }
 0x418   : > { %v1014_v11 = vcombine.low %v1010_v10, %v1011_v2 }
 0x41a   : > { %1016 = vst [vmem:[%s2638_s30] sm:$0xff] %v1014_v11 }
 0x457   : > { %v1211_v3 = vpop.f32.mrb[18].mxu1 }
 0x458   : > { %v1212_v12 = vadd.f32 %v1211_v3, %v2404_v5  ;;  %v1213_v15 = vpop.f32.mrb[19].mxu1 }
 0x459   : > { %v1214_v17 = vadd.f32 %v1213_v15, %v2404_v5 }
 0x45a   : > { %v1234_v19 = vmul.f32 %v1212_v12, %v2406_v8 }
 0x45b   : > { %v1235_v20 = vmul.f32 %v1214_v17, %v2406_v8  ;;  %v1217_v21 = vpop.f32.mrb[20].mxu1 }
 0x45c   : > { %v1218_v22 = vadd.f32 %v1217_v21, %v2411_v13  ;;  %v1219_v23 = vpop.f32.mrb[21].mxu1  ;;  %2030 = vtanh.f32 %v1234_v19 }
 0x45d   : > { %v1220_v24 = vadd.f32 %v1219_v23, %v2411_v13  ;;  %2032 = vtanh.f32 %v1235_v20 }
 0x45e   : > { %v1236_v25 = vmul.f32 %v1218_v22, %v2406_v8 }
 0x45f   : > { %v1237_v26 = vmul.f32 %v1220_v24, %v2406_v8  ;;  %v1223_v28 = vpop.f32.mrb[22].mxu1 }
 0x460   : > { %2034 = vtanh.f32 %v1236_v25  ;;  %v1224_v5 = vadd.f32 %v1223_v28, %v2415_v18  ;;  %v1225_v29 = vpop.f32.mrb[23].mxu1 }
 0x461   : > { %2036 = vtanh.f32 %v1237_v26  ;;  %v1226_v30 = vadd.f32 %v1225_v29, %v2415_v18 }
 0x462   : > { %v1238_v31 = vmul.f32 %v1224_v5, %v2406_v8 }
 0x463   : > { %v1239_v32 = vmul.f32 %v1226_v30, %v2406_v8  ;;  %v1229_v33 = vpop.f32.mrb[24].mxu1 }
 0x464   : > { %v1230_v13 = vadd.f32 %v1229_v33, %v2423_v27  ;;  %v1231_v34 = vpop.f32.mrb[25].mxu1  ;;  %2038 = vtanh.f32 %v1238_v31 }
 0x465   : > { %v1232_v35 = vadd.f32 %v1231_v34, %v2423_v27  ;;  %2040 = vtanh.f32 %v1239_v32 }
 0x466   : > { %v1240_v36 = vmul.f32 %v1230_v13, %v2406_v8  ;;  %v2031_v43 = vpop.eup %2030 }
 0x467   : > { %v1241_v37 = vmul.f32 %v1232_v35, %v2406_v8  ;;  %v2033_v44 = vpop.eup %2032 }
 0x468   : > { %2042 = vtanh.f32 %v1240_v36 }
 0x469   : > { %2044 = vtanh.f32 %v1241_v37 }
 0x46a   : > { %v2035_v18 = vpop.eup %2034 }
 0x46b   : > { %v2037_v46 = vpop.eup %2036  ;;  %v1917_v52 = vpack.c.bf16 %v2035_v18, %v2031_v43 }
 0x46c   : > { %v1915_v54 = vpack.c.bf16 %v2037_v46, %v2033_v44 }
 0x46e   : > { %1916 = vmatprep.subr.bf16.mxu0 %v1915_v54  ;;  %v2039_v55 = vpop.eup %2038 }
 0x46f   : > { %1918 = vmatpush1.bf16.msra.mxu0 %v1917_v52  ;;  %v2041_v56 = vpop.eup %2040 }
 0x472   : > { %v2043_v58 = vpop.eup %2042 }
 0x473   : > { %v2045_v27 = vpop.eup %2044  ;;  %v1921_v59 = vpack.c.bf16 %v2043_v58, %v2039_v55 }
 0x474   : > { %v1919_v60 = vpack.c.bf16 %v2045_v27, %v2041_v56 }
 0x476   : > { %1920 = vmatprep.subr.bf16.mxu0 %v1919_v60 }
 0x477   : > { %1922 = vmatpush1.bf16.msra.mxu0 %v1921_v59 }
 0x47a   : > { %1700 = vmatmul.mubr.msk.f32.vlgmr.msra.gmra.mrb[8].mxu0 %vm676_vm2, %v2433_v47 }
 0x47b   : > { %1320 = vmatprep.mubr.f32.mxu0 %v2143_v4 }
 0x47e   : > { %1701 = vmatmul.mubr.msk.f32.gmra.mrb[10].mxu0 %vm676_vm2, %v2441_v48 }
 0x47f   : > { %1326 = vmatprep.mubr.f32.mxu0 %v2143_v4 }
 0x482   : > { %1702 = vmatmul.mubr.msk.f32.gmra.mrb[12].mxu0 %vm676_vm2, %v2449_v49 }
 0x483   : > { %1332 = vmatprep.mubr.f32.mxu0 %v2143_v4 }
 0x486   : > { %1703 = vmatmul.mubr.msk.f32.gmra.mrb[14].mxu0 %vm676_vm2, %v2457_v50 }
 0x487   : > { %1419 = vmatprep.mubr.f32.mxu0 %v2143_v4 }
 0x54d   : > { %v1316_v62 = vpop.f32.mrb[8].mxu0 }
 0x54e   : > { %v1317_v47 = vadd.f32 %v1316_v62, %v2462_v51  ;;  %v1318_v6 = vpop.f32.mrb[9].mxu0 }
 0x54f   : > { %v1319_v63 = vadd.f32 %v1318_v6, %v2462_v51 }
 0x550   : > { %v1339_v48 = vmul.f32 %v1317_v47, %v2406_v8 }
 0x551   : > { %v1340_v9 = vmul.f32 %v1319_v63, %v2406_v8  ;;  %v1322_v1 = vpop.f32.mrb[10].mxu0 }
 0x552   : > { %v1323_v49 = vadd.f32 %v1322_v1, %v2467_v57  ;;  %v1324_v10 = vpop.f32.mrb[11].mxu0  ;;  %2046 = vtanh.f32 %v1339_v48 }
 0x553   : > { %v1325_v2 = vadd.f32 %v1324_v10, %v2467_v57  ;;  %2048 = vtanh.f32 %v1340_v9 }
 0x554   : > { %v1341_v50 = vmul.f32 %v1323_v49, %v2406_v8 }
 0x555   : > { %v1342_v11 = vmul.f32 %v1325_v2, %v2406_v8  ;;  %v1328_v3 = vpop.f32.mrb[12].mxu0 }
 0x556   : > { %2050 = vtanh.f32 %v1341_v50  ;;  %v1329_v51 = vadd.f32 %v1328_v3, %v2473_v7  ;;  %v1330_v12 = vpop.f32.mrb[13].mxu0 }
 0x557   : > { %2052 = vtanh.f32 %v1342_v11  ;;  %v1331_v15 = vadd.f32 %v1330_v12, %v2473_v7 }
 0x558   : > { %v1343_v17 = vmul.f32 %v1329_v51, %v2406_v8 }
 0x559   : > { %v1344_v19 = vmul.f32 %v1331_v15, %v2406_v8  ;;  %v1334_v20 = vpop.f32.mrb[14].mxu0 }
 0x55a   : > { %v1335_v57 = vadd.f32 %v1334_v20, %v2479_v16  ;;  %v1336_v21 = vpop.f32.mrb[15].mxu0  ;;  %2054 = vtanh.f32 %v1343_v17 }
 0x55b   : > { %v1337_v22 = vadd.f32 %v1336_v21, %v2479_v16  ;;  %2056 = vtanh.f32 %v1344_v19 }
 0x55c   : > { %v1345_v23 = vmul.f32 %v1335_v57, %v2406_v8  ;;  %v2047_v25 = vpop.eup %2046 }
 0x55d   : > { %v1346_v24 = vmul.f32 %v1337_v22, %v2406_v8  ;;  %v2049_v26 = vpop.eup %2048 }
 0x55e   : > { %2058 = vtanh.f32 %v1345_v23 }
 0x55f   : > { %2060 = vtanh.f32 %v1346_v24 }
 0x560   : > { %v2051_v7 = vpop.eup %2050 }
 0x561   : > { %v2053_v28 = vpop.eup %2052  ;;  %v1925_v5 = vpack.c.bf16 %v2051_v7, %v2047_v25 }
 0x562   : > { %v1923_v29 = vpack.c.bf16 %v2053_v28, %v2049_v26 }
 0x564   : > { %1924 = vmatprep.subr.bf16.mxu0 %v1923_v29  ;;  %v2055_v30 = vpop.eup %2054 }
 0x565   : > { %1926 = vmatpush1.bf16.msra.mxu0 %v1925_v5  ;;  %v2057_v31 = vpop.eup %2056 }
 0x568   : > { %v2059_v32 = vpop.eup %2058 }
 0x569   : > { %v2061_v16 = vpop.eup %2060  ;;  %v1929_v33 = vpack.c.bf16 %v2059_v32, %v2055_v30 }
 0x56a   : > { %v1927_v13 = vpack.c.bf16 %v2061_v16, %v2057_v31 }
 0x56c   : > { %1928 = vmatprep.subr.bf16.mxu0 %v1927_v13 }
 0x56d   : > { %1930 = vmatpush1.bf16.msra.mxu0 %v1929_v33 }
 0x570   : > { %1704 = vmatmul.mubr.msk.f32.vlgmr.msra.gmra.mrb[16].mxu0 %vm676_vm2, %v2489_v38 }
 0x571   : > { %1425 = vmatprep.mubr.f32.mxu0 %v2143_v4 }
 0x574   : > { %1705 = vmatmul.mubr.msk.f32.gmra.mrb[18].mxu0 %vm676_vm2, %v2497_v39 }
 0x575   : > { %1431 = vmatprep.mubr.f32.mxu0 %v2143_v4 }
 0x578   : > { %1706 = vmatmul.mubr.msk.f32.gmra.mrb[20].mxu0 %vm676_vm2, %v2505_v40 }
 0x579   : > { %1437 = vmatprep.mubr.f32.mxu0 %v2143_v4 }
 0x57c   : > { %1707 = vmatmul.mubr.msk.f32.gmra.mrb[22].mxu0 %vm676_vm2, %v2513_v41 }
 0x57d   : > { %1524 = vmatprep.mubr.f32.mxu0 %v2143_v4 }
 0x643   : > { %v1421_v34 = vpop.f32.mrb[16].mxu0 }
 0x644   : > { %v1422_v38 = vadd.f32 %v1421_v34, %v2518_v42  ;;  %v1423_v35 = vpop.f32.mrb[17].mxu0 }
 0x645   : > { %v1424_v36 = vadd.f32 %v1423_v35, %v2518_v42 }
 0x646   : > { %v1444_v39 = vmul.f32 %v1422_v38, %v2406_v8 }
 0x647   : > { %v1445_v37 = vmul.f32 %v1424_v36, %v2406_v8  ;;  %v1427_v43 = vpop.f32.mrb[18].mxu0 }
 0x648   : > { %v1428_v40 = vadd.f32 %v1427_v43, %v2523_v53  ;;  %v1429_v44 = vpop.f32.mrb[19].mxu0  ;;  %2062 = vtanh.f32 %v1444_v39 }
 0x649   : > { %v1430_v18 = vadd.f32 %v1429_v44, %v2523_v53  ;;  %2064 = vtanh.f32 %v1445_v37 }
 0x64a   : > { %v1446_v41 = vmul.f32 %v1428_v40, %v2406_v8 }
 0x64b   : > { %v1447_v4 = vmul.f32 %v1430_v18, %v2406_v8  ;;  %v1433_v46 = vpop.f32.mrb[20].mxu0 }
 0x64c   : > { %2066 = vtanh.f32 %v1446_v41  ;;  %v1434_v42 = vadd.f32 %v1433_v46, %v2529_v61  ;;  %v1435_v52 = vpop.f32.mrb[21].mxu0 }
 0x64d   : > { %2068 = vtanh.f32 %v1447_v4  ;;  %v1436_v54 = vadd.f32 %v1435_v52, %v2529_v61 }
 0x64e   : > { %v1448_v55 = vmul.f32 %v1434_v42, %v2406_v8 }
 0x64f   : > { %v1449_v56 = vmul.f32 %v1436_v54, %v2406_v8  ;;  %v1439_v58 = vpop.f32.mrb[22].mxu0 }
 0x650   : > { %v1440_v53 = vadd.f32 %v1439_v58, %v2535_v14  ;;  %v1441_v27 = vpop.f32.mrb[23].mxu0  ;;  %2070 = vtanh.f32 %v1448_v55 }
 0x651   : > { %v1442_v59 = vadd.f32 %v1441_v27, %v2535_v14  ;;  %2072 = vtanh.f32 %v1449_v56 }
 0x652   : > { %v1450_v60 = vmul.f32 %v1440_v53, %v2406_v8  ;;  %v2063_v47 = vpop.eup %2062 }
 0x653   : > { %v1451_v62 = vmul.f32 %v1442_v59, %v2406_v8  ;;  %v2065_v6 = vpop.eup %2064 }
 0x654   : > { %2074 = vtanh.f32 %v1450_v60 }
 0x655   : > { %2076 = vtanh.f32 %v1451_v62 }
 0x656   : > { %v2067_v61 = vpop.eup %2066 }
 0x657   : > { %v2069_v63 = vpop.eup %2068  ;;  %v1933_v48 = vpack.c.bf16 %v2067_v61, %v2063_v47 }
 0x658   : > { %v1931_v9 = vpack.c.bf16 %v2069_v63, %v2065_v6 }
 0x65a   : > { %1932 = vmatprep.subr.bf16.mxu0 %v1931_v9  ;;  %v2071_v1 = vpop.eup %2070 }
 0x65b   : > { %1934 = vmatpush1.bf16.msra.mxu0 %v1933_v48  ;;  %v2073_v14 = vpop.eup %2072 }
 0x65e   : > { %v2075_v49 = vpop.eup %2074 }
 0x65f   : > { %v2077_v10 = vpop.eup %2076  ;;  %v1937_v2 = vpack.c.bf16 %v2075_v49, %v2071_v1 }
 0x660   : > { %v1935_v50 = vpack.c.bf16 %v2077_v10, %v2073_v14 }
 0x662   : > { %1936 = vmatprep.subr.bf16.mxu0 %v1935_v50 }
 0x663   : > { %1938 = vmatpush1.bf16.msra.mxu0 %v1937_v2 }
 0x666   : > { %1708 = vmatmul.mubr.msk.f32.vlgmr.msra.gmra.mrb[24].mxu0 %vm676_vm2, %v2547_v45 }
 0x739   : > { %v1526_v11 = vpop.f32.mrb[24].mxu0 }
 0x73a   : > { %v1527_v3 = vadd.f32 %v1526_v11, %v2630_v0  ;;  %v1528_v51 = vpop.f32.mrb[25].mxu0 }
 0x73b   : > { %v1529_v12 = vadd.f32 %v1528_v51, %v2630_v0 }
 0x73c   : > { %v1531_v15 = vmul.f32 %v1527_v3, %v2406_v8 }
 0x73d   : > { %v1532_v17 = vmul.f32 %v1529_v12, %v2406_v8 }
 0x73f   : > { %v1535_v19 = vcombine.low %v1531_v15, %v1532_v17 }
 0x741   : > { %1537 = vst [vmem:[%s2638_s30 + $0x8] sm:$0xff] %v1535_v19 }
 0x742   : > { %2091 = shalt.err (!%p2088_p3)
}
 0x743   : > { %s2092_s29 = scalar_lea.hbm %s2724_s14, 256  ;;  %s2096_s26 = scalar_lea.hbm %s2779_s10, 512 }
 0x744   : > { %p2093_p4 = scmp.ne.s32.totalorder %s2724_s14, %s2092_s29  ;;  %p2097_p9 = scmp.lt.u32.totalorder %s2724_s14, %s2779_s10 }
 0x745   : > { %p2098_p10 = scmp.lt.u32.totalorder %s2096_s26, %s2092_s29  ;;  %p2100_p12 = scmp.lt.u32.totalorder %s2092_s29, %s2724_s14 }
 0x746   : > { %p2094_p7 = pnand %p2093_p4, %p2241_p5 }
 0x747   : > { %p2099_p11 = por %p2098_p10, %p2097_p9 }
 0x748   : > { %p2095_p8 = pneg %p2094_p7 }
 0x749   : > { %p2101_p13 = por %p2100_p12, %p2099_p11 }
 0x74b   : > { %p2102_p0 = pnand %p2101_p13, %p2095_p8 }
 0x74d   : > { %2105 = shalt.err (!%p2102_p0)
}
 0x74e   : > { %1939 = dma.vmem_to_hbm [thread:$0]  (%p2241_p5), %s2726_s11, 256, %s2724_s14, %s1539_s19  }
 0x74f PF: > { %p1945_p1 = scmp.ge.s32.totalorder %s2140_s18, 2  ;;  %s1565_s21 = sand.u32 1, %s2128_s15  }
 0x750   : > { %s1566_s0 = scalar_lea.sflag [#allocation4], %s1565_s21 }
 0x751   : > { %p1942_p2 = pnand %p1945_p1, %p2245_p6 }
 0x753   : > { %2123 = dma.done.wait (!%p1942_p2), %s1566_s0, 256  }
 0x754   : > { %2125 = vsyncadd (!%p1942_p2), %s1566_s0, 4294967040  ;;  %p21_p3 = scmp.ge.s32.totalorder %s2228_s20, 4   ;;  %s2784_s15 = smov %s2132_s16 }
 0x755   : > { %s2785_s16 = smov %s2136_s17  ;;  %s2786_s17 = smov %s2239_s23 }
 0x756   : > { %s2787_s18 = smov %s2228_s20  ;;  %23 = sbr.rel (!%p21_p3) target bundleno = 5 (0x5), region = 95 }
 0x75d   :  { %1571 = vsyncpa [#allocation4], 1 }
 0x75e   :  { %1573 = vsyncpa [#allocation4 + $0x1], 1 }

// kernel: tpu_custom_call.1
= control target key start
LH: loop header
LB: loop body
LE: loop exit
PB: predicated region body
PF: predicated region fallthrough
CT: control target
= control target key end

     0   :  { %s2139_s0 = inlined_call_operand.<no memory space> [shape: f32[1,1], index: 0, kind: input, shape index: {}]   ;;  %s2140_s1 = inlined_call_operand.vmem [shape: f32[8,1024], index: 1, kind: input, shape index: {}]   ;;  %s2141_s2 = inlined_call_operand.vmem [shape: f32[32,8], index: 2, kind: input, shape index: {}]   ;;  %s2142_s3 = inlined_call_operand.vmem [shape: f32[32,1], index: 3, kind: input, shape index: {}]   ;;  %s2143_s4 = inlined_call_operand.vmem [shape: f32[32,32], index: 4, kind: input, shape index: {}]   ;;  %s2144_s5 = inlined_call_operand.vmem [shape: f32[32,1], index: 5, kind: input, shape index: {}]   ;;  %s2145_s6 = inlined_call_operand.vmem [shape: f32[32,32], index: 6, kind: input, shape index: {}]   ;;  %s2146_s7 = inlined_call_operand.vmem [shape: f32[32,1], index: 7, kind: input, shape index: {}]   ;;  %s2147_s8 = inlined_call_operand.vmem [shape: f32[4,32], index: 8, kind: input, shape index: {}]   ;;  %s2148_s9 = inlined_call_operand.vmem [shape: f32[4,1], index: 9, kind: input, shape index: {}]   ;;  %s2149_s10 = inlined_call_operand.hbm [shape: f32[4,1024], index: 10, kind: output, shape index: {}]  }
   0x1   :  { %15 = sst [smem:[#allocation2]] %s2139_s0 }
   0x2   :  { %16 = vsyncpa [#allocation4], 0 }
   0x3   :  { %18 = vsyncpa [#allocation4 + $0x1], 0  ;;  %s1711_s15 = smov 0   ;;  %s1713_s16 = smov 0  }
   0x4   :  { %s1715_s17 = smov 0   ;;  %s1717_s18 = smov 0  }
   0x5 LB: > { %s1732_s0 = sadd.s32 4294967295, %s1648_s18   ;;  %s1360_s19 = sadd.s32 4294967294, %s1648_s18   ;;  %s1648_s18 = sphi %s1717_s18, %s2155_s18   ;;  %s1644_s17 = sphi %s1715_s17, %s2154_s17   ;;  %s1640_s16 = sphi %s1713_s16, %s2153_s16   ;;  %s1636_s15 = sphi %s1711_s15, %s2152_s15  }
   0x6   : > { %s1736_s20 = sadd.s32 1, %s1648_s18   ;;  %s246_s21 = sadd.s32 1, %s1644_s17 }
   0x7   : > { %s243_s22 = ssub.s32 %s1648_s18, %s1736_s20  ;;  %p256_p0 = scmp.ne.s32.totalorder %s1644_s17, %s1640_s16 }
   0x8   : > { %p244_p1 = scmp.eq.s32.totalorder %s243_s22, 0  ;;  %p257_p2 = scmp.eq.s32.totalorder %s1732_s0, 1 }
   0x9   : > { %p262_p3 = scmp.ne.s32.totalorder %s1640_s16, %s1636_s15  ;;  %p263_p4 = scmp.eq.s32.totalorder %s1360_s19, 1 }
   0xa   : > { %s1747_s23 = scalar_select %p244_p1, %s1644_s17, %s246_s21  }
   0xb   : > { %p1749_p5 = por %p257_p2, %p256_p0  ;;  %p1753_p6 = por %p263_p4, %p262_p3 }
   0xc   : > { %p1363_p7 = scmp.ge.s32.totalorder %s1648_s18, 1  ;;  %p317_p8 = scmp.lt.s32.totalorder %s1648_s18, 3 }
   0xe   : > { %p318_p9 = pnand %p1363_p7, %p317_p8 }
   0xf   : > { %s1365_s26 = sshll.u32 (!%p318_p9), %s1732_s0, 2  ;;  %v1650_v0 = vmov (!%p318_p9), 0.0   ;;  %v367_v1 = vld [vmem:[%s2142_s3] sm:$0xff] (!%p318_p9)  ;;  %v1651_v2 = vmov (!%p318_p9), 0   ;;  %v369_v3 = vld [vmem:[%s2142_s3 + $0x10] sm:$0xff] (!%p318_p9)  ;;  %v368_v4 = vld [vmem:[%s2142_s3 + $0x8] sm:$0xff] (!%p318_p9) }
  0x10   : > { %321 = sbr.rel (%p318_p9) target bundleno = 1742 (0x6ce), region = 60  ;;  %p356_p10 = scmp.lt.s32.totalorder (!%p318_p9), %s1365_s26, 7  ;;  %488 = vmatprep.mubr.f32.mxu0 (!%p318_p9), %v1650_v0  ;;  %627 = vmatprep.mubr.f32.mxu1 (!%p318_p9), %v1650_v0  ;;  %v370_v5 = vld [vmem:[%s2142_s3 + $0x18] sm:$0xff] (!%p318_p9)  ;;  %v1784_v8 = vld [vmem:[%s2141_s2] sm:$0xff] (!%p318_p9)  ;;  %vm411_vm0 = vcmask (!%p318_p9), 64512   ;;  %v376_v10 = vld [vmem:[%s2144_s5 + $0x8] sm:$0xff] (!%p318_p9) }
  0x11   : > { %1488 = vset.pattern.permute.xlu0 (!%p318_p9), %v1651_v2  ;;  %1489 = vset.pattern.permute.xlu1 (!%p318_p9), %v1651_v2  ;;  %v375_v9 = vld [vmem:[%s2144_s5] sm:$0xff] (!%p318_p9)  ;;  %v1798_v11 = vld [vmem:[%s2141_s2 + $0x8] sm:$0xff] (!%p318_p9)  ;;  %v377_v12 = vld [vmem:[%s2144_s5 + $0x10] sm:$0xff] (!%p318_p9)  ;;  %s362_s11 = sld [smem:[#allocation2]] (!%p318_p9)  ;;  %vm550_vm1 = vcmask (!%p318_p9), 261120  }
  0x12   : > { %393 = vperm.xlu0 (!%p318_p9), %1488, %v367_v1   ;;  %403 = vperm.xlu1 (!%p318_p9), %1489, %v369_v3   ;;  %v378_v13 = vld [vmem:[%s2144_s5 + $0x18] sm:$0xff] (!%p318_p9)  ;;  %v1812_v14 = vld [vmem:[%s2141_s2 + $0x10] sm:$0xff] (!%p318_p9)  ;;  %v383_v15 = vld [vmem:[%s2146_s7] sm:$0xff] (!%p318_p9) }
  0x13   : > { %v384_v16 = vld [vmem:[%s2146_s7 + $0x8] sm:$0xff] (!%p318_p9)  ;;  %v1826_v17 = vld [vmem:[%s2141_s2 + $0x18] sm:$0xff] (!%p318_p9)  ;;  %v385_v18 = vld [vmem:[%s2146_s7 + $0x10] sm:$0xff] (!%p318_p9) }
  0x14   : > { %v386_v19 = vld [vmem:[%s2146_s7 + $0x18] sm:$0xff] (!%p318_p9)  ;;  %v388_v20 = vld [vmem:[%s2148_s9] sm:$0xf] (!%p318_p9)  ;;  %v1877_v63 = vld [vmem:[%s2143_s4 + $0x8] sm:$0xff] (!%p318_p9) }
  0x15   : > { %v1869_v62 = vld [vmem:[%s2143_s4] sm:$0xff] (!%p318_p9)  ;;  %v1885_v1 = vld [vmem:[%s2143_s4 + $0x10] sm:$0xff] (!%p318_p9)  ;;  %v1893_v2 = vld [vmem:[%s2143_s4 + $0x18] sm:$0xff] (!%p318_p9) }
  0x16   : > { %398 = vperm.xlu0 (!%p318_p9), %1488, %v368_v4   ;;  %408 = vperm.xlu1 (!%p318_p9), %1489, %v370_v5  }
  0x17   : > { %s2157_s26 = smov (!%p356_p10, %s1365_s26), 7  ;;  %v1842_v23 = vstv %s362_s11 }
  0x18   : > { %s1366_s19 = sshll.u32 %s2157_s26, 3  ;;  %s1398_s26 = sshll.u32 %s1732_s0, 8 }
  0x19   : > { %s1777_s27 = scalar_lea.vmem %s2140_s1, %s1366_s19  ;;  %s2094_s14 = scalar_lea.hbm %s2149_s10, %s1398_s26 }
  0x1a   : > { %v390_v6 = vld [vmem:[%s1777_s27 + $0x8] sm:$0xff]  ;;  %v389_v7 = vld [vmem:[%s1777_s27] sm:$0xff]  ;;  %532 = vperm.xlu0 %1488, %v375_v9   ;;  %537 = vperm.xlu1 %1489, %v376_v10   ;;  %s1652_s0 = smov [#allocation3]  }
  0x1b   : > { %424 = vmatprep.subr.mxu0 %v390_v6  ;;  %s1590_s22 = sshll.u32 %s1652_s0, 4  ;;  %s1591_s22 = int_to_ptr.vmem [resolvable:$false] %s1590_s22 }
  0x1c   : > { %425 = vmatpush1.msra.mxu0 %v389_v7  ;;  %s1592_s28 = scalar_lea.vmem %s1591_s22, 512 }
  0x1d   : > { %1367 = vmatmul.mubr.msk.f32.vlgmr.msra.gmra.mrb[0].mxu0 %vm411_vm0, %v1784_v8 }
  0x1e   : > { %494 = vmatprep.mubr.f32.mxu0 %v1650_v0  ;;  %542 = vperm.xlu0 %1488, %v377_v12  }
  0x1f   : > { %547 = vperm.xlu1 %1489, %v378_v13  }
  0x21   : > { %1368 = vmatmul.mubr.msk.f32.gmra.mrb[2].mxu0 %vm411_vm0, %v1798_v11 }
  0x22   : > { %500 = vmatprep.mubr.f32.mxu0 %v1650_v0  ;;  %670 = vperm.xlu0 %1488, %v383_v15  }
  0x23   : > { %675 = vperm.xlu1 %1489, %v384_v16  }
  0x25   : > { %1369 = vmatmul.mubr.msk.f32.gmra.mrb[4].mxu0 %vm411_vm0, %v1812_v14 }
  0x26   : > { %506 = vmatprep.mubr.f32.mxu0 %v1650_v0  ;;  %680 = vperm.xlu0 %1488, %v385_v18  }
  0x27   : > { %685 = vperm.xlu1 %1489, %v386_v19  }
  0x29   : > { %1370 = vmatmul.mubr.msk.f32.gmra.mrb[6].mxu0 %vm411_vm0, %v1826_v17 }
  0x2a   : > { %764 = vmatprep.mubr.f32.mxu0 %v1650_v0  ;;  %807 = vperm.xlu0 %1488, %v388_v20  }
  0x91   : > { %v1840_v21 = vpop.permute.xlu0 %393  ;;  %v1851_v33 = vpop.permute.xlu1 %403 }
  0x95   : > { %v1847_v28 = vpop.permute.xlu0 %398  ;;  %v1859_v42 = vpop.permute.xlu1 %408 }
  0x99   : > { %v1898_v3 = vpop.permute.xlu0 %532  ;;  %v1903_v10 = vpop.permute.xlu1 %537 }
  0x9d   : > { %v1909_v20 = vpop.permute.xlu0 %542 }
  0xf0   : > { %v490_v22 = vpop.f32.mrb[0].mxu0 }
  0xf1   : > { %v491_v24 = vadd.f32 %v490_v22, %v1840_v21  ;;  %v492_v25 = vpop.f32.mrb[1].mxu0 }
  0xf2   : > { %v493_v26 = vadd.f32 %v492_v25, %v1840_v21 }
  0xf3   : > { %v514_v27 = vmul.f32 %v1842_v23, %v491_v24 }
  0xf4   : > { %v515_v29 = vmul.f32 %v1842_v23, %v493_v26  ;;  %v496_v30 = vpop.f32.mrb[2].mxu0 }
  0xf5   : > { %v497_v31 = vadd.f32 %v496_v30, %v1847_v28  ;;  %v498_v32 = vpop.f32.mrb[3].mxu0  ;;  %1490 = vtanh.f32 %v514_v27  ;;  %v1915_v30 = vpop.permute.xlu1 %547 }
  0xf6   : > { %v499_v34 = vadd.f32 %v498_v32, %v1847_v28  ;;  %1492 = vtanh.f32 %v515_v29 }
  0xf7   : > { %v516_v35 = vmul.f32 %v1842_v23, %v497_v31 }
  0xf8   : > { %v517_v36 = vmul.f32 %v1842_v23, %v499_v34  ;;  %v502_v37 = vpop.f32.mrb[4].mxu0 }
  0xf9   : > { %1494 = vtanh.f32 %v516_v35  ;;  %v503_v38 = vadd.f32 %v502_v37, %v1851_v33  ;;  %v504_v39 = vpop.f32.mrb[5].mxu0 }
  0xfa   : > { %1496 = vtanh.f32 %v517_v36  ;;  %v505_v40 = vadd.f32 %v504_v39, %v1851_v33 }
  0xfb   : > { %v518_v41 = vmul.f32 %v1842_v23, %v503_v38 }
  0xfc   : > { %v519_v43 = vmul.f32 %v1842_v23, %v505_v40  ;;  %v508_v44 = vpop.f32.mrb[6].mxu0 }
  0xfd   : > { %v509_v45 = vadd.f32 %v508_v44, %v1859_v42  ;;  %v510_v46 = vpop.f32.mrb[7].mxu0  ;;  %1498 = vtanh.f32 %v518_v41 }
  0xfe   : > { %v511_v47 = vadd.f32 %v510_v46, %v1859_v42  ;;  %1500 = vtanh.f32 %v519_v43 }
  0xff   : > { %v520_v48 = vmul.f32 %v1842_v23, %v509_v45  ;;  %v1491_v50 = vpop.eup %1490 }
 0x100   : > { %v521_v49 = vmul.f32 %v1842_v23, %v511_v47  ;;  %v1493_v51 = vpop.eup %1492 }
 0x101   : > { %1502 = vtanh.f32 %v520_v48 }
 0x102   : > { %1504 = vtanh.f32 %v521_v49 }
 0x103   : > { %v1495_v52 = vpop.eup %1494 }
 0x104   : > { %v1497_v53 = vpop.eup %1496  ;;  %v1401_v54 = vpack.c.bf16 %v1495_v52, %v1491_v50  ;;  %v1925_v52 = vld [vmem:[%s2145_s6] sm:$0xff] }
 0x105   : > { %v1399_v55 = vpack.c.bf16 %v1497_v53, %v1493_v51  ;;  %v1933_v53 = vld [vmem:[%s2145_s6 + $0x8] sm:$0xff] }
 0x107   : > { %1400 = vmatprep.subr.bf16.mxu1 %v1399_v55  ;;  %v1499_v56 = vpop.eup %1498  ;;  %v1949_v55 = vld [vmem:[%s2145_s6 + $0x18] sm:$0xff] }
 0x108   : > { %1402 = vmatpush1.bf16.msra.mxu1 %v1401_v54  ;;  %v1501_v57 = vpop.eup %1500  ;;  %v1941_v54 = vld [vmem:[%s2145_s6 + $0x10] sm:$0xff] }
 0x10b   : > { %v1503_v58 = vpop.eup %1502 }
 0x10c   : > { %v1505_v59 = vpop.eup %1504  ;;  %v1405_v60 = vpack.c.bf16 %v1503_v58, %v1499_v56  ;;  %v1954_v56 = vpop.permute.xlu0 %670 }
 0x10d   : > { %v1403_v61 = vpack.c.bf16 %v1505_v59, %v1501_v57 }
 0x10f   : > { %1404 = vmatprep.subr.bf16.mxu1 %v1403_v61 }
 0x110   : > { %1406 = vmatpush1.bf16.msra.mxu1 %v1405_v60 }
 0x113   : > { %1371 = vmatmul.mubr.msk.f32.vlgmr.msra.gmra.mrb[0].mxu1 %vm550_vm1, %v1869_v62 }
 0x114   : > { %633 = vmatprep.mubr.f32.mxu1 %v1650_v0 }
 0x117   : > { %1372 = vmatmul.mubr.msk.f32.gmra.mrb[2].mxu1 %vm550_vm1, %v1877_v63 }
 0x118   : > { %639 = vmatprep.mubr.f32.mxu1 %v1650_v0 }
 0x11b   : > { %1373 = vmatmul.mubr.msk.f32.gmra.mrb[4].mxu1 %vm550_vm1, %v1885_v1 }
 0x11c   : > { %645 = vmatprep.mubr.f32.mxu1 %v1650_v0 }
 0x11f   : > { %1374 = vmatmul.mubr.msk.f32.gmra.mrb[6].mxu1 %vm550_vm1, %v1893_v2 }
 0x120   : > { %877 = vmatprep.mubr.f32.mxu1 %v1650_v0 }
 0x1e6   : > { %v629_v4 = vpop.f32.mrb[0].mxu1 }
 0x1e7   : > { %v630_v5 = vadd.f32 %v629_v4, %v1898_v3  ;;  %v631_v6 = vpop.f32.mrb[1].mxu1  ;;  %v1959_v4 = vpop.permute.xlu1 %675 }
 0x1e8   : > { %v632_v7 = vadd.f32 %v631_v6, %v1898_v3 }
 0x1e9   : > { %v652_v9 = vmul.f32 %v630_v5, %v1842_v23 }
 0x1ea   : > { %v653_v12 = vmul.f32 %v632_v7, %v1842_v23  ;;  %v635_v13 = vpop.f32.mrb[2].mxu1 }
 0x1eb   : > { %v636_v15 = vadd.f32 %v635_v13, %v1903_v10  ;;  %v637_v16 = vpop.f32.mrb[3].mxu1  ;;  %1506 = vtanh.f32 %v652_v9 }
 0x1ec   : > { %v638_v18 = vadd.f32 %v637_v16, %v1903_v10  ;;  %1508 = vtanh.f32 %v653_v12 }
 0x1ed   : > { %v654_v19 = vmul.f32 %v636_v15, %v1842_v23  ;;  %v1965_v15 = vpop.permute.xlu0 %680 }
 0x1ee   : > { %v655_v22 = vmul.f32 %v638_v18, %v1842_v23  ;;  %v641_v24 = vpop.f32.mrb[4].mxu1 }
 0x1ef   : > { %1510 = vtanh.f32 %v654_v19  ;;  %v642_v25 = vadd.f32 %v641_v24, %v1909_v20  ;;  %v643_v26 = vpop.f32.mrb[5].mxu1 }
 0x1f0   : > { %1512 = vtanh.f32 %v655_v22  ;;  %v644_v27 = vadd.f32 %v643_v26, %v1909_v20  ;;  %v1971_v26 = vpop.permute.xlu1 %685 }
 0x1f1   : > { %v656_v29 = vmul.f32 %v642_v25, %v1842_v23 }
 0x1f2   : > { %v657_v31 = vmul.f32 %v644_v27, %v1842_v23  ;;  %v647_v32 = vpop.f32.mrb[6].mxu1 }
 0x1f3   : > { %v648_v34 = vadd.f32 %v647_v32, %v1915_v30  ;;  %v649_v35 = vpop.f32.mrb[7].mxu1  ;;  %1514 = vtanh.f32 %v656_v29 }
 0x1f4   : > { %v650_v36 = vadd.f32 %v649_v35, %v1915_v30  ;;  %1516 = vtanh.f32 %v657_v31 }
 0x1f5   : > { %v658_v37 = vmul.f32 %v648_v34, %v1842_v23  ;;  %v1507_v39 = vpop.eup %1506 }
 0x1f6   : > { %v659_v38 = vmul.f32 %v650_v36, %v1842_v23  ;;  %v1509_v40 = vpop.eup %1508 }
 0x1f7   : > { %1518 = vtanh.f32 %v658_v37 }
 0x1f8   : > { %1520 = vtanh.f32 %v659_v38 }
 0x1f9   : > { %v1511_v41 = vpop.eup %1510 }
 0x1fa   : > { %v1513_v43 = vpop.eup %1512  ;;  %v1409_v44 = vpack.c.bf16 %v1511_v41, %v1507_v39 }
 0x1fb   : > { %v1407_v45 = vpack.c.bf16 %v1513_v43, %v1509_v40 }
 0x1fd   : > { %1408 = vmatprep.subr.bf16.mxu0 %v1407_v45  ;;  %v1515_v46 = vpop.eup %1514 }
 0x1fe   : > { %1410 = vmatpush1.bf16.msra.mxu0 %v1409_v44  ;;  %v1517_v47 = vpop.eup %1516 }
 0x201   : > { %v1519_v48 = vpop.eup %1518 }
 0x202   : > { %v1521_v49 = vpop.eup %1520  ;;  %v1413_v50 = vpack.c.bf16 %v1519_v48, %v1515_v46 }
 0x203   : > { %v1411_v51 = vpack.c.bf16 %v1521_v49, %v1517_v47 }
 0x205   : > { %1412 = vmatprep.subr.bf16.mxu0 %v1411_v51  ;;  %v1982_v51 = vld [vmem:[%s2147_s8] sm:$0xf] }
 0x206   : > { %1414 = vmatpush1.bf16.msra.mxu0 %v1413_v50  ;;  %v892_v50 = vld [vmem:[%s1777_s27 + $0x18] sm:$0xff] }
 0x209   : > { %1375 = vmatmul.mubr.msk.f32.vlgmr.msra.gmra.mrb[8].mxu0 %vm550_vm1, %v1925_v52 }
 0x20a   : > { %770 = vmatprep.mubr.f32.mxu0 %v1650_v0 }
 0x20d   : > { %1376 = vmatmul.mubr.msk.f32.gmra.mrb[10].mxu0 %vm550_vm1, %v1933_v53 }
 0x20e   : > { %776 = vmatprep.mubr.f32.mxu0 %v1650_v0 }
 0x211   : > { %1377 = vmatmul.mubr.msk.f32.gmra.mrb[12].mxu0 %vm550_vm1, %v1941_v54 }
 0x212   : > { %782 = vmatprep.mubr.f32.mxu0 %v1650_v0 }
 0x215   : > { %1378 = vmatmul.mubr.msk.f32.gmra.mrb[14].mxu0 %vm550_vm1, %v1949_v55 }
 0x216   : > { %1062 = vmatprep.mubr.f32.mxu0 %v1650_v0 }
 0x2dc   : > { %v766_v57 = vpop.f32.mrb[8].mxu0 }
 0x2dd   : > { %v767_v58 = vadd.f32 %v766_v57, %v1954_v56  ;;  %v768_v59 = vpop.f32.mrb[9].mxu0  ;;  %v891_v57 = vld [vmem:[%s1777_s27 + $0x10] sm:$0xff]  ;;  %s352_s27 = sand.u32 1, %s1640_s16  }
 0x2de   : > { %v769_v60 = vadd.f32 %v768_v59, %v1954_v56  ;;  %s1364_s29 = sshll.u32 %s352_s27, 4  ;;  %s1287_s19 = scalar_lea.sflag [#allocation4], %s352_s27 }
 0x2df   : > { %v789_v61 = vmul.f32 %v767_v58, %v1842_v23  ;;  %v2001_v58 = vpop.permute.xlu0 %807  ;;  %s2013_s30 = scalar_lea.vmem [#allocation3], %s1364_s29 }
 0x2e0   : > { %v790_v5 = vmul.f32 %v769_v60, %v1842_v23  ;;  %v772_v6 = vpop.f32.mrb[10].mxu0  ;;  %s1301_s11 = sshll.u32 %s2013_s30, 4  ;;  %s2096_s11 = int_to_ptr.vmem [resolvable:$true] %s1301_s11 }
 0x2e1   : > { %v773_v7 = vadd.f32 %v772_v6, %v1959_v4  ;;  %v774_v9 = vpop.f32.mrb[11].mxu0  ;;  %1522 = vtanh.f32 %v789_v61  ;;  %s1586_s21 = scalar_lea.vmem %s2096_s11, 256  ;;  %p1593_p0 = scmp.lt.s32.totalorder %s2096_s11, %s1591_s22 }
 0x2e2   : > { %v775_v12 = vadd.f32 %v774_v9, %v1959_v4  ;;  %1524 = vtanh.f32 %v790_v5  ;;  %p1587_p11 = scmp.ne.s32.totalorder %s2096_s11, %s1586_s21  ;;  %p1594_p1 = scmp.lt.s32.totalorder %s1592_s28, %s1586_s21 }
 0x2e3   : > { %v791_v13 = vmul.f32 %v773_v7, %v1842_v23 }
 0x2e4   : > { %v792_v16 = vmul.f32 %v775_v12, %v1842_v23  ;;  %v778_v18 = vpop.f32.mrb[12].mxu0  ;;  %p1588_p12 = pnand %p1587_p11, %p1749_p5  ;;  %p1595_p2 = por %p1594_p1, %p1593_p0 }
 0x2e5   : > { %1526 = vtanh.f32 %v791_v13  ;;  %v779_v19 = vadd.f32 %v778_v18, %v1965_v15  ;;  %v780_v22 = vpop.f32.mrb[13].mxu0 }
 0x2e6   : > { %1528 = vtanh.f32 %v792_v16  ;;  %v781_v24 = vadd.f32 %v780_v22, %v1965_v15  ;;  %p1589_p13 = pneg %p1588_p12 }
 0x2e7   : > { %v793_v25 = vmul.f32 %v779_v19, %v1842_v23 }
 0x2e8   : > { %v794_v27 = vmul.f32 %v781_v24, %v1842_v23  ;;  %v784_v29 = vpop.f32.mrb[14].mxu0  ;;  %p1596_p3 = pnand %p1595_p2, %p1589_p13 }
 0x2e9   : > { %v785_v31 = vadd.f32 %v784_v29, %v1971_v26  ;;  %v786_v32 = vpop.f32.mrb[15].mxu0  ;;  %1530 = vtanh.f32 %v793_v25 }
 0x2ea   : > { %v787_v34 = vadd.f32 %v786_v32, %v1971_v26  ;;  %1532 = vtanh.f32 %v794_v27 }
 0x2eb   : > { %v795_v35 = vmul.f32 %v785_v31, %v1842_v23  ;;  %v1523_v37 = vpop.eup %1522 }
 0x2ec   : > { %v796_v36 = vmul.f32 %v787_v34, %v1842_v23  ;;  %v1525_v38 = vpop.eup %1524 }
 0x2ed   : > { %1534 = vtanh.f32 %v795_v35 }
 0x2ee   : > { %1536 = vtanh.f32 %v796_v36 }
 0x2ef   : > { %v1527_v39 = vpop.eup %1526 }
 0x2f0   : > { %v1529_v40 = vpop.eup %1528  ;;  %v1417_v41 = vpack.c.bf16 %v1527_v39, %v1523_v37 }
 0x2f1   : > { %v1415_v43 = vpack.c.bf16 %v1529_v40, %v1525_v38 }
 0x2f3   : > { %1416 = vmatprep.subr.bf16.mxu1 %v1415_v43  ;;  %v1531_v44 = vpop.eup %1530 }
 0x2f4   : > { %1418 = vmatpush1.bf16.msra.mxu1 %v1417_v41  ;;  %v1533_v45 = vpop.eup %1532 }
 0x2f7   : > { %v1535_v46 = vpop.eup %1534 }
 0x2f8   : > { %v1537_v47 = vpop.eup %1536  ;;  %v1421_v48 = vpack.c.bf16 %v1535_v46, %v1531_v44 }
 0x2f9   : > { %v1419_v49 = vpack.c.bf16 %v1537_v47, %v1533_v45 }
 0x2fb   : > { %1420 = vmatprep.subr.bf16.mxu1 %v1419_v49 }
 0x2fc   : > { %1422 = vmatpush1.bf16.msra.mxu1 %v1421_v48 }
 0x2fd   : > { %893 = vmatprep.subr.mxu1 %v892_v50 }
 0x2ff   : > { %1379 = vmatmul.mubr.msk.f32.vlgmr.msra.gmra.mrb[8].mxu1 %vm550_vm1, %v1982_v51 }
 0x300   : > { %894 = vmatpush1.msra.mxu1 %v891_v57  ;;  %957 = vmatprep.mubr.f32.mxu1 %v1650_v0 }
 0x303   : > { %1380 = vmatmul.mubr.msk.f32.vlgmr.msra.gmra.mrb[10].mxu1 %vm411_vm0, %v1784_v8 }
 0x304   : > { %963 = vmatprep.mubr.f32.mxu1 %v1650_v0 }
 0x307   : > { %1381 = vmatmul.mubr.msk.f32.gmra.mrb[12].mxu1 %vm411_vm0, %v1798_v11 }
 0x308   : > { %969 = vmatprep.mubr.f32.mxu1 %v1650_v0 }
 0x30b   : > { %1382 = vmatmul.mubr.msk.f32.gmra.mrb[14].mxu1 %vm411_vm0, %v1812_v14 }
 0x30c   : > { %975 = vmatprep.mubr.f32.mxu1 %v1650_v0 }
 0x30f   : > { %1383 = vmatmul.mubr.msk.f32.gmra.mrb[16].mxu1 %vm411_vm0, %v1826_v17 }
 0x310   : > { %1167 = vmatprep.mubr.f32.mxu1 %v1650_v0 }
 0x3d2   : > { %v879_v8 = vpop.f32.mrb[8].mxu1 }
 0x3d3   : > { %v880_v59 = vadd.f32 %v879_v8, %v2001_v58  ;;  %v881_v60 = vpop.f32.mrb[9].mxu1 }
 0x3d4   : > { %v882_v11 = vadd.f32 %v881_v60, %v2001_v58 }
 0x3d5   : > { %v884_v14 = vmul.f32 %v880_v59, %v1842_v23 }
 0x3d6   : > { %v885_v61 = vmul.f32 %v882_v11, %v1842_v23  ;;  %v959_v5 = vpop.f32.mrb[10].mxu1 }
 0x3d7   : > { %v960_v17 = vadd.f32 %v959_v5, %v1840_v21  ;;  %v961_v6 = vpop.f32.mrb[11].mxu1 }
 0x3d8   : > { %v888_v7 = vcombine.low %v884_v14, %v885_v61  ;;  %v962_v9 = vadd.f32 %v961_v6, %v1840_v21 }
 0x3d9   : > { %v982_v12 = vmul.f32 %v960_v17, %v1842_v23 }
 0x3da   : > { %v983_v13 = vmul.f32 %v962_v9, %v1842_v23  ;;  %v965_v16 = vpop.f32.mrb[12].mxu1  ;;  %890 = vst [vmem:[%s2013_s30] sm:$0xff] %v888_v7 }
 0x3db   : > { %v966_v18 = vadd.f32 %v965_v16, %v1847_v28  ;;  %v967_v19 = vpop.f32.mrb[13].mxu1  ;;  %1538 = vtanh.f32 %v982_v12 }
 0x3dc   : > { %v968_v22 = vadd.f32 %v967_v19, %v1847_v28  ;;  %1540 = vtanh.f32 %v983_v13 }
 0x3dd   : > { %v984_v24 = vmul.f32 %v966_v18, %v1842_v23 }
 0x3de   : > { %v985_v21 = vmul.f32 %v968_v22, %v1842_v23  ;;  %v971_v25 = vpop.f32.mrb[14].mxu1 }
 0x3df   : > { %1542 = vtanh.f32 %v984_v24  ;;  %v972_v27 = vadd.f32 %v971_v25, %v1851_v33  ;;  %v973_v29 = vpop.f32.mrb[15].mxu1 }
 0x3e0   : > { %1544 = vtanh.f32 %v985_v21  ;;  %v974_v31 = vadd.f32 %v973_v29, %v1851_v33 }
 0x3e1   : > { %v986_v32 = vmul.f32 %v972_v27, %v1842_v23 }
 0x3e2   : > { %v987_v34 = vmul.f32 %v974_v31, %v1842_v23  ;;  %v977_v35 = vpop.f32.mrb[16].mxu1 }
 0x3e3   : > { %v978_v28 = vadd.f32 %v977_v35, %v1859_v42  ;;  %v979_v36 = vpop.f32.mrb[17].mxu1  ;;  %1546 = vtanh.f32 %v986_v32 }
 0x3e4   : > { %v980_v37 = vadd.f32 %v979_v36, %v1859_v42  ;;  %1548 = vtanh.f32 %v987_v34 }
 0x3e5   : > { %v988_v38 = vmul.f32 %v978_v28, %v1842_v23  ;;  %v1539_v40 = vpop.eup %1538 }
 0x3e6   : > { %v989_v39 = vmul.f32 %v980_v37, %v1842_v23  ;;  %v1541_v41 = vpop.eup %1540 }
 0x3e7   : > { %1550 = vtanh.f32 %v988_v38 }
 0x3e8   : > { %1552 = vtanh.f32 %v989_v39 }
 0x3e9   : > { %v1543_v33 = vpop.eup %1542 }
 0x3ea   : > { %v1545_v43 = vpop.eup %1544  ;;  %v1425_v44 = vpack.c.bf16 %v1543_v33, %v1539_v40 }
 0x3eb   : > { %v1423_v45 = vpack.c.bf16 %v1545_v43, %v1541_v41 }
 0x3ed   : > { %1424 = vmatprep.subr.bf16.mxu0 %v1423_v45  ;;  %v1547_v46 = vpop.eup %1546 }
 0x3ee   : > { %1426 = vmatpush1.bf16.msra.mxu0 %v1425_v44  ;;  %v1549_v47 = vpop.eup %1548 }
 0x3f1   : > { %v1551_v48 = vpop.eup %1550 }
 0x3f2   : > { %v1553_v42 = vpop.eup %1552  ;;  %v1429_v49 = vpack.c.bf16 %v1551_v48, %v1547_v46 }
 0x3f3   : > { %v1427_v50 = vpack.c.bf16 %v1553_v42, %v1549_v47 }
 0x3f5   : > { %1428 = vmatprep.subr.bf16.mxu0 %v1427_v50 }
 0x3f6   : > { %1430 = vmatpush1.bf16.msra.mxu0 %v1429_v49 }
 0x3f9   : > { %1384 = vmatmul.mubr.msk.f32.vlgmr.msra.gmra.mrb[16].mxu0 %vm550_vm1, %v1869_v62 }
 0x3fa   : > { %1068 = vmatprep.mubr.f32.mxu0 %v1650_v0 }
 0x3fd   : > { %1385 = vmatmul.mubr.msk.f32.gmra.mrb[18].mxu0 %vm550_vm1, %v1877_v63 }
 0x3fe   : > { %1074 = vmatprep.mubr.f32.mxu0 %v1650_v0 }
 0x401   : > { %1386 = vmatmul.mubr.msk.f32.gmra.mrb[20].mxu0 %vm550_vm1, %v1885_v1 }
 0x402   : > { %1080 = vmatprep.mubr.f32.mxu0 %v1650_v0 }
 0x405   : > { %1387 = vmatmul.mubr.msk.f32.gmra.mrb[22].mxu0 %vm550_vm1, %v1893_v2 }
 0x406   : > { %1272 = vmatprep.mubr.f32.mxu0 %v1650_v0 }
 0x4cc   : > { %v1064_v57 = vpop.f32.mrb[16].mxu0 }
 0x4cd   : > { %v1065_v62 = vadd.f32 %v1064_v57, %v1898_v3  ;;  %v1066_v8 = vpop.f32.mrb[17].mxu0 }
 0x4ce   : > { %v1067_v59 = vadd.f32 %v1066_v8, %v1898_v3 }
 0x4cf   : > { %v1087_v63 = vmul.f32 %v1065_v62, %v1842_v23 }
 0x4d0   : > { %v1088_v60 = vmul.f32 %v1067_v59, %v1842_v23  ;;  %v1070_v11 = vpop.f32.mrb[18].mxu0 }
 0x4d1   : > { %v1071_v1 = vadd.f32 %v1070_v11, %v1903_v10  ;;  %v1072_v14 = vpop.f32.mrb[19].mxu0  ;;  %1554 = vtanh.f32 %v1087_v63 }
 0x4d2   : > { %v1073_v61 = vadd.f32 %v1072_v14, %v1903_v10  ;;  %1556 = vtanh.f32 %v1088_v60 }
 0x4d3   : > { %v1089_v2 = vmul.f32 %v1071_v1, %v1842_v23 }
 0x4d4   : > { %v1090_v5 = vmul.f32 %v1073_v61, %v1842_v23  ;;  %v1076_v17 = vpop.f32.mrb[20].mxu0 }
 0x4d5   : > { %1558 = vtanh.f32 %v1089_v2  ;;  %v1077_v3 = vadd.f32 %v1076_v17, %v1909_v20  ;;  %v1078_v6 = vpop.f32.mrb[21].mxu0 }
 0x4d6   : > { %1560 = vtanh.f32 %v1090_v5  ;;  %v1079_v7 = vadd.f32 %v1078_v6, %v1909_v20 }
 0x4d7   : > { %v1091_v9 = vmul.f32 %v1077_v3, %v1842_v23 }
 0x4d8   : > { %v1092_v12 = vmul.f32 %v1079_v7, %v1842_v23  ;;  %v1082_v13 = vpop.f32.mrb[22].mxu0 }
 0x4d9   : > { %v1083_v10 = vadd.f32 %v1082_v13, %v1915_v30  ;;  %v1084_v16 = vpop.f32.mrb[23].mxu0  ;;  %1562 = vtanh.f32 %v1091_v9 }
 0x4da   : > { %v1085_v18 = vadd.f32 %v1084_v16, %v1915_v30  ;;  %1564 = vtanh.f32 %v1092_v12 }
 0x4db   : > { %v1093_v19 = vmul.f32 %v1083_v10, %v1842_v23  ;;  %v1555_v24 = vpop.eup %1554 }
 0x4dc   : > { %v1094_v22 = vmul.f32 %v1085_v18, %v1842_v23  ;;  %v1557_v21 = vpop.eup %1556 }
 0x4dd   : > { %1566 = vtanh.f32 %v1093_v19 }
 0x4de   : > { %1568 = vtanh.f32 %v1094_v22 }
 0x4df   : > { %v1559_v20 = vpop.eup %1558 }
 0x4e0   : > { %v1561_v25 = vpop.eup %1560  ;;  %v1433_v27 = vpack.c.bf16 %v1559_v20, %v1555_v24 }
 0x4e1   : > { %v1431_v29 = vpack.c.bf16 %v1561_v25, %v1557_v21 }
 0x4e3   : > { %1432 = vmatprep.subr.bf16.mxu1 %v1431_v29  ;;  %v1563_v31 = vpop.eup %1562 }
 0x4e4   : > { %1434 = vmatpush1.bf16.msra.mxu1 %v1433_v27  ;;  %v1565_v32 = vpop.eup %1564 }
 0x4e7   : > { %v1567_v34 = vpop.eup %1566 }
 0x4e8   : > { %v1569_v30 = vpop.eup %1568  ;;  %v1437_v35 = vpack.c.bf16 %v1567_v34, %v1563_v31 }
 0x4e9   : > { %v1435_v28 = vpack.c.bf16 %v1569_v30, %v1565_v32 }
 0x4eb   : > { %1436 = vmatprep.subr.bf16.mxu1 %v1435_v28 }
 0x4ec   : > { %1438 = vmatpush1.bf16.msra.mxu1 %v1437_v35 }
 0x4ef   : > { %1388 = vmatmul.mubr.msk.f32.vlgmr.msra.gmra.mrb[18].mxu1 %vm550_vm1, %v1925_v52 }
 0x4f0   : > { %1173 = vmatprep.mubr.f32.mxu1 %v1650_v0 }
 0x4f3   : > { %1389 = vmatmul.mubr.msk.f32.gmra.mrb[20].mxu1 %vm550_vm1, %v1933_v53 }
 0x4f4   : > { %1179 = vmatprep.mubr.f32.mxu1 %v1650_v0 }
 0x4f7   : > { %1390 = vmatmul.mubr.msk.f32.gmra.mrb[22].mxu1 %vm550_vm1, %v1941_v54 }
 0x4f8   : > { %1185 = vmatprep.mubr.f32.mxu1 %v1650_v0 }
 0x4fb   : > { %1391 = vmatmul.mubr.msk.f32.gmra.mrb[24].mxu1 %vm550_vm1, %v1949_v55 }
 0x5c2   : > { %v1169_v36 = vpop.f32.mrb[18].mxu1 }
 0x5c3   : > { %v1170_v37 = vadd.f32 %v1169_v36, %v1954_v56  ;;  %v1171_v38 = vpop.f32.mrb[19].mxu1 }
 0x5c4   : > { %v1172_v52 = vadd.f32 %v1171_v38, %v1954_v56 }
 0x5c5   : > { %v1192_v39 = vmul.f32 %v1170_v37, %v1842_v23 }
 0x5c6   : > { %v1193_v53 = vmul.f32 %v1172_v52, %v1842_v23  ;;  %v1175_v40 = vpop.f32.mrb[20].mxu1 }
 0x5c7   : > { %v1176_v41 = vadd.f32 %v1175_v40, %v1959_v4  ;;  %v1177_v33 = vpop.f32.mrb[21].mxu1  ;;  %1570 = vtanh.f32 %v1192_v39 }
 0x5c8   : > { %v1178_v54 = vadd.f32 %v1177_v33, %v1959_v4  ;;  %1572 = vtanh.f32 %v1193_v53 }
 0x5c9   : > { %v1194_v0 = vmul.f32 %v1176_v41, %v1842_v23 }
 0x5ca   : > { %v1195_v55 = vmul.f32 %v1178_v54, %v1842_v23  ;;  %v1181_v43 = vpop.f32.mrb[22].mxu1 }
 0x5cb   : > { %1574 = vtanh.f32 %v1194_v0  ;;  %v1182_v56 = vadd.f32 %v1181_v43, %v1965_v15  ;;  %v1183_v44 = vpop.f32.mrb[23].mxu1 }
 0x5cc   : > { %1576 = vtanh.f32 %v1195_v55  ;;  %v1184_v45 = vadd.f32 %v1183_v44, %v1965_v15 }
 0x5cd   : > { %v1196_v46 = vmul.f32 %v1182_v56, %v1842_v23 }
 0x5ce   : > { %v1197_v47 = vmul.f32 %v1184_v45, %v1842_v23  ;;  %v1187_v48 = vpop.f32.mrb[24].mxu1 }
 0x5cf   : > { %v1188_v4 = vadd.f32 %v1187_v48, %v1971_v26  ;;  %v1189_v42 = vpop.f32.mrb[25].mxu1  ;;  %1578 = vtanh.f32 %v1196_v46 }
 0x5d0   : > { %v1190_v49 = vadd.f32 %v1189_v42, %v1971_v26  ;;  %1580 = vtanh.f32 %v1197_v47 }
 0x5d1   : > { %v1198_v50 = vmul.f32 %v1188_v4, %v1842_v23  ;;  %v1571_v62 = vpop.eup %1570 }
 0x5d2   : > { %v1199_v57 = vmul.f32 %v1190_v49, %v1842_v23  ;;  %v1573_v8 = vpop.eup %1572 }
 0x5d3   : > { %1582 = vtanh.f32 %v1198_v50 }
 0x5d4   : > { %1584 = vtanh.f32 %v1199_v57 }
 0x5d5   : > { %v1575_v15 = vpop.eup %1574 }
 0x5d6   : > { %v1577_v59 = vpop.eup %1576  ;;  %v1441_v63 = vpack.c.bf16 %v1575_v15, %v1571_v62 }
 0x5d7   : > { %v1439_v60 = vpack.c.bf16 %v1577_v59, %v1573_v8 }
 0x5d9   : > { %1440 = vmatprep.subr.bf16.mxu0 %v1439_v60  ;;  %v1579_v11 = vpop.eup %1578 }
 0x5da   : > { %1442 = vmatpush1.bf16.msra.mxu0 %v1441_v63  ;;  %v1581_v26 = vpop.eup %1580 }
 0x5dd   : > { %v1583_v1 = vpop.eup %1582 }
 0x5de   : > { %v1585_v14 = vpop.eup %1584  ;;  %v1445_v61 = vpack.c.bf16 %v1583_v1, %v1579_v11 }
 0x5df   : > { %v1443_v2 = vpack.c.bf16 %v1585_v14, %v1581_v26 }
 0x5e1   : > { %1444 = vmatprep.subr.bf16.mxu0 %v1443_v2 }
 0x5e2   : > { %1446 = vmatpush1.bf16.msra.mxu0 %v1445_v61 }
 0x5e5   : > { %1392 = vmatmul.mubr.msk.f32.vlgmr.msra.gmra.mrb[24].mxu0 %vm550_vm1, %v1982_v51 }
 0x6b8   : > { %v1274_v5 = vpop.f32.mrb[24].mxu0 }
 0x6b9   : > { %v1275_v17 = vadd.f32 %v1274_v5, %v2001_v58  ;;  %v1276_v3 = vpop.f32.mrb[25].mxu0 }
 0x6ba   : > { %v1277_v6 = vadd.f32 %v1276_v3, %v2001_v58 }
 0x6bb   : > { %v1279_v7 = vmul.f32 %v1275_v17, %v1842_v23 }
 0x6bc   : > { %v1280_v9 = vmul.f32 %v1277_v6, %v1842_v23 }
 0x6be   : > { %v1283_v12 = vcombine.low %v1279_v7, %v1280_v9 }
 0x6c0   : > { %1285 = vst [vmem:[%s2013_s30 + $0x8] sm:$0xff] %v1283_v12 }
 0x6c1   : > { %1599 = shalt.err (!%p1596_p3)
}
 0x6c2   : > { %s1600_s27 = scalar_lea.hbm %s2094_s14, 256  ;;  %s1604_s26 = scalar_lea.hbm %s2149_s10, 512 }
 0x6c3   : > { %p1601_p4 = scmp.ne.s32.totalorder %s2094_s14, %s1600_s27  ;;  %p1605_p9 = scmp.lt.u32.totalorder %s2094_s14, %s2149_s10 }
 0x6c4   : > { %p1606_p10 = scmp.lt.u32.totalorder %s1604_s26, %s1600_s27  ;;  %p1608_p12 = scmp.lt.u32.totalorder %s1600_s27, %s2094_s14 }
 0x6c5   : > { %p1602_p7 = pnand %p1601_p4, %p1749_p5 }
 0x6c6   : > { %p1607_p11 = por %p1606_p10, %p1605_p9 }
 0x6c7   : > { %p1603_p8 = pneg %p1602_p7 }
 0x6c8   : > { %p1609_p13 = por %p1608_p12, %p1607_p11 }
 0x6ca   : > { %p1610_p0 = pnand %p1609_p13, %p1603_p8 }
 0x6cc   : > { %1613 = shalt.err (!%p1610_p0)
}
 0x6cd   : > { %1447 = dma.vmem_to_hbm [thread:$0]  (%p1749_p5), %s2096_s11, 256, %s2094_s14, %s1287_s19  }
 0x6ce PF: > { %p1453_p1 = scmp.ge.s32.totalorder %s1648_s18, 2  ;;  %s1313_s21 = sand.u32 1, %s1636_s15  }
 0x6cf   : > { %s1314_s0 = scalar_lea.sflag [#allocation4], %s1313_s21 }
 0x6d0   : > { %p1450_p2 = pnand %p1453_p1, %p1753_p6 }
 0x6d2   : > { %1631 = dma.done.wait (!%p1450_p2), %s1314_s0, 256  }
 0x6d3   : > { %1633 = vsyncadd (!%p1450_p2), %s1314_s0, 4294967040  ;;  %p21_p3 = scmp.ge.s32.totalorder %s1736_s20, 4   ;;  %s2152_s15 = smov %s1640_s16 }
 0x6d4   : > { %s2153_s16 = smov %s1644_s17  ;;  %s2154_s17 = smov %s1747_s23 }
 0x6d5   : > { %s2155_s18 = smov %s1736_s20  ;;  %23 = sbr.rel (!%p21_p3) target bundleno = 5 (0x5), region = 95 }
 0x6dc   :  { %1319 = vsyncpa [#allocation4], 1 }
 0x6dd   :  { %1321 = vsyncpa [#allocation4 + $0x1], 1 }

</bundles_post_ra>
